<compile_context>
chip_gen: v7x
topology: tpu7x:2x2x1
jax: 0.10.0
libtpu: 0.0.40
codegen_flags: <defaults>
</compile_context>

<pallas_src>
import math
from functools import partial

import jax
import jax.numpy as jnp
from jax.experimental import pallas as pl
from jax.experimental.pallas import tpu as pltpu

# ---------------- model config (small, consistent with the module) ----------------
VOCAB = 16        # input_dim
HIDDEN = 32       # hidden_dim
NUM_HEADS = 4
HEAD_DIM = HIDDEN // NUM_HEADS
NUM_LAYERS = 2
BATCH = 2
SEQ = 8
LN_EPS = 1e-5


# ---------------- fused Pallas kernel ----------------
def _layernorm(x, gamma, beta):
    mu = jnp.mean(x, axis=-1, keepdims=True)
    var = jnp.mean((x - mu) ** 2, axis=-1, keepdims=True)
    return (x - mu) * jax.lax.rsqrt(var + LN_EPS) * gamma + beta


def transformer_fused_kernel(x_ref,
                             wqkv_ref, bqkv_ref, wo_ref, bo_ref,
                             ln1g_ref, ln1b_ref,
                             w1_ref, b1_ref, w2_ref, b2_ref,
                             ln2g_ref, ln2b_ref,
                             wfc_ref, bfc_ref,
                             o_ref,
                             *, num_layers, num_heads, head_dim,
                             batch, seq, hidden):
    # x_ref: (B*S, H) f32 activations; weight refs are stacked over layers (leading axis L).
    x = x_ref[...]                                    # (B*S, H) f32
    inv_sqrt_d = 1.0 / math.sqrt(head_dim)

    for l in range(num_layers):                       # static unroll over layers
        # ---- fused QKV projection (one MXU matmul, bf16 operands, f32 accum) ----
        xb = x.astype(jnp.bfloat16)
        qkv = jnp.dot(xb, wqkv_ref[l],
                      preferred_element_type=jnp.float32) + bqkv_ref[l]   # (B*S, 3H) f32

        # ---- multi-head attention, batched over B via 3-D einsums ----
        head_outs = []
        for h in range(num_heads):                    # static unroll over heads
            lo = h * head_dim
            qh = qkv[:, lo:lo + head_dim]
            kh = qkv[:, hidden + lo:hidden + lo + head_dim]
            vh = qkv[:, 2 * hidden + lo:2 * hidden + lo + head_dim]
            qh = qh.reshape(batch, seq, head_dim).astype(jnp.bfloat16)    # (B,S,hd)
            kh = kh.reshape(batch, seq, head_dim).astype(jnp.bfloat16)
            vh = vh.reshape(batch, seq, head_dim).astype(jnp.bfloat16)

            energy = jnp.einsum('bqd,bkd->bqk', qh, kh,
                                preferred_element_type=jnp.float32) * inv_sqrt_d
            m = jnp.max(energy, axis=-1, keepdims=True)
            e = jnp.exp(energy - m)
            attn = e * pl.reciprocal(jnp.sum(e, axis=-1, keepdims=True), approx=True)
            ctx = jnp.einsum('bqk,bkd->bqd', attn.astype(jnp.bfloat16), vh,
                             preferred_element_type=jnp.float32)          # (B,S,hd) f32
            head_outs.append(ctx.reshape(batch * seq, head_dim))
        attended = jnp.concatenate(head_outs, axis=-1)                    # (B*S, H) f32

        attn_out = jnp.dot(attended.astype(jnp.bfloat16), wo_ref[l],
                           preferred_element_type=jnp.float32) + bo_ref[l]

        # residual + LayerNorm1 (dropout = identity, inference)
        h1 = _layernorm(x + attn_out, ln1g_ref[l], ln1b_ref[l])

        # FeedForward: relu(h1 @ W1 + b1) @ W2 + b2
        ff = jnp.dot(h1.astype(jnp.bfloat16), w1_ref[l],
                     preferred_element_type=jnp.float32) + b1_ref[l]
        ff = jnp.maximum(ff, 0.0)
        ff = jnp.dot(ff.astype(jnp.bfloat16), w2_ref[l],
                     preferred_element_type=jnp.float32) + b2_ref[l]

        # residual + LayerNorm2
        x = _layernorm(h1 + ff, ln2g_ref[l], ln2b_ref[l])

    # ---- final fc + softmax (exact division so rows sum to 1) ----
    logits = jnp.dot(x.astype(jnp.bfloat16), wfc_ref[...],
                     preferred_element_type=jnp.float32) + bfc_ref[...]   # (B*S, V)
    m = jnp.max(logits, axis=-1, keepdims=True)
    e = jnp.exp(logits - m)
    probs = e / jnp.sum(e, axis=-1, keepdims=True)
    o_ref[...] = probs.astype(o_ref.dtype)


# ---------------- wrapper ----------------
@jax.jit
def transformer_forward(token_ids, params):
    B, S = token_ids.shape
    # TODO(synk): embedding gather (nn.Embedding) + positional-encoding add are left to XLA
    # as glue (data-dependent gather); the hot path below is one fused Pallas kernel.
    x = params["emb"][token_ids] + params["pe"][:S][None, :, :]           # (B, S, H) f32
    x_flat = x.reshape(B * S, HIDDEN)

    weights = (params["wqkv"], params["bqkv"], params["wo"], params["bo"],
               params["ln1_g"], params["ln1_b"],
               params["w1"], params["b1"], params["w2"], params["b2"],
               params["ln2_g"], params["ln2_b"],
               params["w_fc"], params["b_fc"])

    vmem = pl.BlockSpec(memory_space=pltpu.MemorySpace.VMEM)
    probs_flat = pl.pallas_call(
        partial(transformer_fused_kernel,
                num_layers=NUM_LAYERS, num_heads=NUM_HEADS, head_dim=HEAD_DIM,
                batch=B, seq=S, hidden=HIDDEN),
        out_shape=jax.ShapeDtypeStruct((B * S, VOCAB), jnp.float32),
        in_specs=[vmem] * (1 + len(weights)),
        out_specs=vmem,
    )(x_flat, *weights)
    return probs_flat.reshape(B, S, VOCAB)


# ---------------- parameter construction (deterministic) ----------------
def positional_encoding(max_len, hidden_dim):
    pos = jnp.arange(max_len, dtype=jnp.float32)[:, None]
    div_term = jnp.exp(jnp.arange(0, hidden_dim, 2, dtype=jnp.float32)
                       * (-math.log(10000.0) / hidden_dim))
    pe = jnp.zeros((max_len, hidden_dim), jnp.float32)
    pe = pe.at[:, 0::2].set(jnp.sin(pos * div_term))
    pe = pe.at[:, 1::2].set(jnp.cos(pos * div_term))
    return pe


def make_params(key):
    keys = jax.random.split(key, NUM_LAYERS + 2)

    def linear(k, fan_in, fan_out):
        k1, k2 = jax.random.split(k)
        w = jax.random.normal(k1, (fan_in, fan_out), jnp.float32) / math.sqrt(fan_in)
        b = jax.random.normal(k2, (1, fan_out), jnp.float32) * 0.01
        return w, b

    wqkv, bqkv, wo, bo = [], [], [], []
    w1, b1, w2, b2 = [], [], [], []
    ln1g, ln1b, ln2g, ln2b = [], [], [], []
    for i in range(NUM_LAYERS):
        ks = jax.random.split(keys[i], 6)
        wq, bq = linear(ks[0], HIDDEN, HIDDEN)
        wk, bk = linear(ks[1], HIDDEN, HIDDEN)
        wv, bv = linear(ks[2], HIDDEN, HIDDEN)
        wo_i, bo_i = linear(ks[3], HIDDEN, HIDDEN)
        w1_i, b1_i = linear(ks[4], HIDDEN, HIDDEN * 4)
        w2_i, b2_i = linear(ks[5], HIDDEN * 4, HIDDEN)
        wqkv.append(jnp.concatenate([wq, wk, wv], axis=1))    # (H, 3H)
        bqkv.append(jnp.concatenate([bq, bk, bv], axis=1))    # (1, 3H)
        wo.append(wo_i); bo.append(bo_i)
        w1.append(w1_i); b1.append(b1_i)
        w2.append(w2_i); b2.append(b2_i)
        ln1g.append(jnp.ones((1, HIDDEN), jnp.float32)); ln1b.append(jnp.zeros((1, HIDDEN), jnp.float32))
        ln2g.append(jnp.ones((1, HIDDEN), jnp.float32)); ln2b.append(jnp.zeros((1, HIDDEN), jnp.float32))

    w_fc, b_fc = linear(keys[NUM_LAYERS], HIDDEN, VOCAB)
    emb = jax.random.normal(keys[NUM_LAYERS + 1], (VOCAB, HIDDEN), jnp.float32) * 0.1

    stack = lambda xs: jnp.stack(xs, axis=0)
    return dict(
        emb=emb,
        pe=positional_encoding(1000, HIDDEN),
        # matmul weights stored in bf16 (MXU operands); biases / LN params stay f32
        wqkv=stack(wqkv).astype(jnp.bfloat16), bqkv=stack(bqkv),
        wo=stack(wo).astype(jnp.bfloat16),     bo=stack(bo),
        ln1_g=stack(ln1g), ln1_b=stack(ln1b),
        w1=stack(w1).astype(jnp.bfloat16),     b1=stack(b1),
        w2=stack(w2).astype(jnp.bfloat16),     b2=stack(b2),
        ln2_g=stack(ln2g), ln2_b=stack(ln2b),
        w_fc=w_fc.astype(jnp.bfloat16),        b_fc=b_fc,
    )


if __name__ == "__main__":
    key = jax.random.PRNGKey(0)
    kp, kx = jax.random.split(key)
    params = make_params(kp)

    token_ids = jax.random.randint(kx, (BATCH, SEQ), 0, VOCAB, dtype=jnp.int32)

    probs = transformer_forward(token_ids, params)
    probs = jax.block_until_ready(probs)

    assert probs.shape == (BATCH, SEQ, VOCAB)
    # softmax rows must sum to 1
    assert jnp.allclose(jnp.sum(probs, axis=-1), 1.0, atol=1e-4)
    assert bool(jnp.all(jnp.isfinite(probs)))
    print("KERNEL_OK")
</pallas_src>

<mosaic_0001>
module attributes {stable_mosaic.version = 11 : i64} {
  func.func @transformer_fused_kernel(%arg0: memref<16x32xf32, #tpu.memory_space<vmem>>, %arg1: memref<2x32x96xbf16, #tpu.memory_space<vmem>>, %arg2: memref<2x1x96xf32, #tpu.memory_space<vmem>>, %arg3: memref<2x32x32xbf16, #tpu.memory_space<vmem>>, %arg4: memref<2x1x32xf32, #tpu.memory_space<vmem>>, %arg5: memref<2x1x32xf32, #tpu.memory_space<vmem>>, %arg6: memref<2x1x32xf32, #tpu.memory_space<vmem>>, %arg7: memref<2x32x128xbf16, #tpu.memory_space<vmem>>, %arg8: memref<2x1x128xf32, #tpu.memory_space<vmem>>, %arg9: memref<2x128x32xbf16, #tpu.memory_space<vmem>>, %arg10: memref<2x1x32xf32, #tpu.memory_space<vmem>>, %arg11: memref<2x1x32xf32, #tpu.memory_space<vmem>>, %arg12: memref<2x1x32xf32, #tpu.memory_space<vmem>>, %arg13: memref<32x16xbf16, #tpu.memory_space<vmem>>, %arg14: memref<1x16xf32, #tpu.memory_space<vmem>>, %arg15: memref<16x16xf32, #tpu.memory_space<vmem>>) attributes {dimension_semantics = [], scalar_prefetch = 0 : i64, scratch_operands = 0 : i64, tpu.core_type = #tpu.core_type<tc>} {
    %c0 = arith.constant 0 : index
    %c0_0 = arith.constant 0 : index
    %0 = vector.load %arg0[%c0, %c0_0] : memref<16x32xf32, #tpu.memory_space<vmem>>, vector<16x32xf32>
    %1 = arith.truncf %0 : vector<16x32xf32> to vector<16x32xbf16>
    %c0_1 = arith.constant 0 : index
    %c0_2 = arith.constant 0 : index
    %c0_3 = arith.constant 0 : index
    %2 = vector.load %arg1[%c0_1, %c0_2, %c0_3] : memref<2x32x96xbf16, #tpu.memory_space<vmem>>, vector<1x32x96xbf16>
    %3 = vector.shape_cast %2 : vector<1x32x96xbf16> to vector<32x96xbf16>
    %cst = arith.constant dense<0.000000e+00> : vector<16x96xf32>
    %4 = tpu.matmul %1, %3, %cst {dimension_numbers = #tpu.dot_dimension_numbers<[1], [0], [0], [1], [0, 0, 1, 1], [], []>} : vector<16x32xbf16>, vector<32x96xbf16>, vector<16x96xf32> -> vector<16x96xf32>
    %c0_4 = arith.constant 0 : index
    %c0_5 = arith.constant 0 : index
    %c0_6 = arith.constant 0 : index
    %5 = vector.load %arg2[%c0_4, %c0_5, %c0_6] : memref<2x1x96xf32, #tpu.memory_space<vmem>>, vector<1x1x96xf32>
    %6 = vector.shape_cast %5 : vector<1x1x96xf32> to vector<1x96xf32>
    %7 = vector.broadcast %6 : vector<1x96xf32> to vector<16x96xf32>
    %8 = arith.addf %4, %7 : vector<16x96xf32>
    %9 = vector.extract_strided_slice %8 {offsets = [0, 0], sizes = [16, 8], strides = [1, 1]} : vector<16x96xf32> to vector<16x8xf32>
    %10 = vector.extract_strided_slice %8 {offsets = [0, 32], sizes = [16, 8], strides = [1, 1]} : vector<16x96xf32> to vector<16x8xf32>
    %11 = vector.extract_strided_slice %8 {offsets = [0, 64], sizes = [16, 8], strides = [1, 1]} : vector<16x96xf32> to vector<16x8xf32>
    %12 = vector.shape_cast %9 : vector<16x8xf32> to vector<2x8x8xf32>
    %13 = arith.truncf %12 : vector<2x8x8xf32> to vector<2x8x8xbf16>
    %14 = vector.shape_cast %10 : vector<16x8xf32> to vector<2x8x8xf32>
    %15 = arith.truncf %14 : vector<2x8x8xf32> to vector<2x8x8xbf16>
    %16 = vector.shape_cast %11 : vector<16x8xf32> to vector<2x8x8xf32>
    %17 = arith.truncf %16 : vector<2x8x8xf32> to vector<2x8x8xbf16>
    "tpu.trace_start"() <{level = 10 : i32, message = "bqd,bkd->bqk"}> : () -> ()
    %cst_7 = arith.constant dense<0.000000e+00> : vector<2x8x8xf32>
    %18 = tpu.matmul %13, %15, %cst_7 {dimension_numbers = #tpu.dot_dimension_numbers<[2], [2], [1], [1], [0, 0, 0, 1, 1, 1], [0], [0]>} : vector<2x8x8xbf16>, vector<2x8x8xbf16>, vector<2x8x8xf32> -> vector<2x8x8xf32>
    "tpu.trace_stop"() : () -> ()
    %cst_8 = arith.constant 0.353553385 : f32
    %19 = vector.broadcast %cst_8 : f32 to vector<2x8x8xf32>
    %20 = arith.mulf %18, %19 : vector<2x8x8xf32>
    %cst_9 = arith.constant dense<0xFF800000> : vector<2x8xf32>
    %21 = vector.multi_reduction <maximumf>, %20, %cst_9 [2] : vector<2x8x8xf32> to vector<2x8xf32>
    %22 = vector.shape_cast %21 : vector<2x8xf32> to vector<2x8x1xf32>
    %23 = vector.broadcast %22 : vector<2x8x1xf32> to vector<2x8x8xf32>
    %24 = arith.subf %20, %23 : vector<2x8x8xf32>
    %25 = math.exp %24 : vector<2x8x8xf32>
    %cst_10 = arith.constant dense<0.000000e+00> : vector<2x8xf32>
    %26 = vector.multi_reduction <add>, %25, %cst_10 [2] : vector<2x8x8xf32> to vector<2x8xf32>
    %27 = vector.shape_cast %26 : vector<2x8xf32> to vector<2x8x1xf32>
    %28 = tpu.reciprocal %27 {approx = true} : vector<2x8x1xf32> -> vector<2x8x1xf32>
    %29 = vector.broadcast %28 : vector<2x8x1xf32> to vector<2x8x8xf32>
    %30 = arith.mulf %25, %29 : vector<2x8x8xf32>
    %31 = arith.truncf %30 : vector<2x8x8xf32> to vector<2x8x8xbf16>
    "tpu.trace_start"() <{level = 10 : i32, message = "bqk,bkd->bqd"}> : () -> ()
    %cst_11 = arith.constant dense<0.000000e+00> : vector<2x8x8xf32>
    %32 = tpu.matmul %31, %17, %cst_11 {dimension_numbers = #tpu.dot_dimension_numbers<[2], [1], [1], [2], [0, 0, 0, 1, 1, 2], [0], [0]>} : vector<2x8x8xbf16>, vector<2x8x8xbf16>, vector<2x8x8xf32> -> vector<2x8x8xf32>
    "tpu.trace_stop"() : () -> ()
    %33 = vector.shape_cast %32 : vector<2x8x8xf32> to vector<16x8xf32>
    %34 = vector.extract_strided_slice %8 {offsets = [0, 8], sizes = [16, 8], strides = [1, 1]} : vector<16x96xf32> to vector<16x8xf32>
    %35 = vector.extract_strided_slice %8 {offsets = [0, 40], sizes = [16, 8], strides = [1, 1]} : vector<16x96xf32> to vector<16x8xf32>
    %36 = vector.extract_strided_slice %8 {offsets = [0, 72], sizes = [16, 8], strides = [1, 1]} : vector<16x96xf32> to vector<16x8xf32>
    %37 = vector.shape_cast %34 : vector<16x8xf32> to vector<2x8x8xf32>
    %38 = arith.truncf %37 : vector<2x8x8xf32> to vector<2x8x8xbf16>
    %39 = vector.shape_cast %35 : vector<16x8xf32> to vector<2x8x8xf32>
    %40 = arith.truncf %39 : vector<2x8x8xf32> to vector<2x8x8xbf16>
    %41 = vector.shape_cast %36 : vector<16x8xf32> to vector<2x8x8xf32>
    %42 = arith.truncf %41 : vector<2x8x8xf32> to vector<2x8x8xbf16>
    "tpu.trace_start"() <{level = 10 : i32, message = "bqd,bkd->bqk"}> : () -> ()
    %cst_12 = arith.constant dense<0.000000e+00> : vector<2x8x8xf32>
    %43 = tpu.matmul %38, %40, %cst_12 {dimension_numbers = #tpu.dot_dimension_numbers<[2], [2], [1], [1], [0, 0, 0, 1, 1, 1], [0], [0]>} : vector<2x8x8xbf16>, vector<2x8x8xbf16>, vector<2x8x8xf32> -> vector<2x8x8xf32>
    "tpu.trace_stop"() : () -> ()
    %cst_13 = arith.constant 0.353553385 : f32
    %44 = vector.broadcast %cst_13 : f32 to vector<2x8x8xf32>
    %45 = arith.mulf %43, %44 : vector<2x8x8xf32>
    %cst_14 = arith.constant dense<0xFF800000> : vector<2x8xf32>
    %46 = vector.multi_reduction <maximumf>, %45, %cst_14 [2] : vector<2x8x8xf32> to vector<2x8xf32>
    %47 = vector.shape_cast %46 : vector<2x8xf32> to vector<2x8x1xf32>
    %48 = vector.broadcast %47 : vector<2x8x1xf32> to vector<2x8x8xf32>
    %49 = arith.subf %45, %48 : vector<2x8x8xf32>
    %50 = math.exp %49 : vector<2x8x8xf32>
    %cst_15 = arith.constant dense<0.000000e+00> : vector<2x8xf32>
    %51 = vector.multi_reduction <add>, %50, %cst_15 [2] : vector<2x8x8xf32> to vector<2x8xf32>
    %52 = vector.shape_cast %51 : vector<2x8xf32> to vector<2x8x1xf32>
    %53 = tpu.reciprocal %52 {approx = true} : vector<2x8x1xf32> -> vector<2x8x1xf32>
    %54 = vector.broadcast %53 : vector<2x8x1xf32> to vector<2x8x8xf32>
    %55 = arith.mulf %50, %54 : vector<2x8x8xf32>
    %56 = arith.truncf %55 : vector<2x8x8xf32> to vector<2x8x8xbf16>
    "tpu.trace_start"() <{level = 10 : i32, message = "bqk,bkd->bqd"}> : () -> ()
    %cst_16 = arith.constant dense<0.000000e+00> : vector<2x8x8xf32>
    %57 = tpu.matmul %56, %42, %cst_16 {dimension_numbers = #tpu.dot_dimension_numbers<[2], [1], [1], [2], [0, 0, 0, 1, 1, 2], [0], [0]>} : vector<2x8x8xbf16>, vector<2x8x8xbf16>, vector<2x8x8xf32> -> vector<2x8x8xf32>
    "tpu.trace_stop"() : () -> ()
    %58 = vector.shape_cast %57 : vector<2x8x8xf32> to vector<16x8xf32>
    %59 = vector.extract_strided_slice %8 {offsets = [0, 16], sizes = [16, 8], strides = [1, 1]} : vector<16x96xf32> to vector<16x8xf32>
    %60 = vector.extract_strided_slice %8 {offsets = [0, 48], sizes = [16, 8], strides = [1, 1]} : vector<16x96xf32> to vector<16x8xf32>
    %61 = vector.extract_strided_slice %8 {offsets = [0, 80], sizes = [16, 8], strides = [1, 1]} : vector<16x96xf32> to vector<16x8xf32>
    %62 = vector.shape_cast %59 : vector<16x8xf32> to vector<2x8x8xf32>
    %63 = arith.truncf %62 : vector<2x8x8xf32> to vector<2x8x8xbf16>
    %64 = vector.shape_cast %60 : vector<16x8xf32> to vector<2x8x8xf32>
    %65 = arith.truncf %64 : vector<2x8x8xf32> to vector<2x8x8xbf16>
    %66 = vector.shape_cast %61 : vector<16x8xf32> to vector<2x8x8xf32>
    %67 = arith.truncf %66 : vector<2x8x8xf32> to vector<2x8x8xbf16>
    "tpu.trace_start"() <{level = 10 : i32, message = "bqd,bkd->bqk"}> : () -> ()
    %cst_17 = arith.constant dense<0.000000e+00> : vector<2x8x8xf32>
    %68 = tpu.matmul %63, %65, %cst_17 {dimension_numbers = #tpu.dot_dimension_numbers<[2], [2], [1], [1], [0, 0, 0, 1, 1, 1], [0], [0]>} : vector<2x8x8xbf16>, vector<2x8x8xbf16>, vector<2x8x8xf32> -> vector<2x8x8xf32>
    "tpu.trace_stop"() : () -> ()
    %cst_18 = arith.constant 0.353553385 : f32
    %69 = vector.broadcast %cst_18 : f32 to vector<2x8x8xf32>
    %70 = arith.mulf %68, %69 : vector<2x8x8xf32>
    %cst_19 = arith.constant dense<0xFF800000> : vector<2x8xf32>
    %71 = vector.multi_reduction <maximumf>, %70, %cst_19 [2] : vector<2x8x8xf32> to vector<2x8xf32>
    %72 = vector.shape_cast %71 : vector<2x8xf32> to vector<2x8x1xf32>
    %73 = vector.broadcast %72 : vector<2x8x1xf32> to vector<2x8x8xf32>
    %74 = arith.subf %70, %73 : vector<2x8x8xf32>
    %75 = math.exp %74 : vector<2x8x8xf32>
    %cst_20 = arith.constant dense<0.000000e+00> : vector<2x8xf32>
    %76 = vector.multi_reduction <add>, %75, %cst_20 [2] : vector<2x8x8xf32> to vector<2x8xf32>
    %77 = vector.shape_cast %76 : vector<2x8xf32> to vector<2x8x1xf32>
    %78 = tpu.reciprocal %77 {approx = true} : vector<2x8x1xf32> -> vector<2x8x1xf32>
    %79 = vector.broadcast %78 : vector<2x8x1xf32> to vector<2x8x8xf32>
    %80 = arith.mulf %75, %79 : vector<2x8x8xf32>
    %81 = arith.truncf %80 : vector<2x8x8xf32> to vector<2x8x8xbf16>
    "tpu.trace_start"() <{level = 10 : i32, message = "bqk,bkd->bqd"}> : () -> ()
    %cst_21 = arith.constant dense<0.000000e+00> : vector<2x8x8xf32>
    %82 = tpu.matmul %81, %67, %cst_21 {dimension_numbers = #tpu.dot_dimension_numbers<[2], [1], [1], [2], [0, 0, 0, 1, 1, 2], [0], [0]>} : vector<2x8x8xbf16>, vector<2x8x8xbf16>, vector<2x8x8xf32> -> vector<2x8x8xf32>
    "tpu.trace_stop"() : () -> ()
    %83 = vector.shape_cast %82 : vector<2x8x8xf32> to vector<16x8xf32>
    %84 = vector.extract_strided_slice %8 {offsets = [0, 24], sizes = [16, 8], strides = [1, 1]} : vector<16x96xf32> to vector<16x8xf32>
    %85 = vector.extract_strided_slice %8 {offsets = [0, 56], sizes = [16, 8], strides = [1, 1]} : vector<16x96xf32> to vector<16x8xf32>
    %86 = vector.extract_strided_slice %8 {offsets = [0, 88], sizes = [16, 8], strides = [1, 1]} : vector<16x96xf32> to vector<16x8xf32>
    %87 = vector.shape_cast %84 : vector<16x8xf32> to vector<2x8x8xf32>
    %88 = arith.truncf %87 : vector<2x8x8xf32> to vector<2x8x8xbf16>
    %89 = vector.shape_cast %85 : vector<16x8xf32> to vector<2x8x8xf32>
    %90 = arith.truncf %89 : vector<2x8x8xf32> to vector<2x8x8xbf16>
    %91 = vector.shape_cast %86 : vector<16x8xf32> to vector<2x8x8xf32>
    %92 = arith.truncf %91 : vector<2x8x8xf32> to vector<2x8x8xbf16>
    "tpu.trace_start"() <{level = 10 : i32, message = "bqd,bkd->bqk"}> : () -> ()
    %cst_22 = arith.constant dense<0.000000e+00> : vector<2x8x8xf32>
    %93 = tpu.matmul %88, %90, %cst_22 {dimension_numbers = #tpu.dot_dimension_numbers<[2], [2], [1], [1], [0, 0, 0, 1, 1, 1], [0], [0]>} : vector<2x8x8xbf16>, vector<2x8x8xbf16>, vector<2x8x8xf32> -> vector<2x8x8xf32>
    "tpu.trace_stop"() : () -> ()
    %cst_23 = arith.constant 0.353553385 : f32
    %94 = vector.broadcast %cst_23 : f32 to vector<2x8x8xf32>
    %95 = arith.mulf %93, %94 : vector<2x8x8xf32>
    %cst_24 = arith.constant dense<0xFF800000> : vector<2x8xf32>
    %96 = vector.multi_reduction <maximumf>, %95, %cst_24 [2] : vector<2x8x8xf32> to vector<2x8xf32>
    %97 = vector.shape_cast %96 : vector<2x8xf32> to vector<2x8x1xf32>
    %98 = vector.broadcast %97 : vector<2x8x1xf32> to vector<2x8x8xf32>
    %99 = arith.subf %95, %98 : vector<2x8x8xf32>
    %100 = math.exp %99 : vector<2x8x8xf32>
    %cst_25 = arith.constant dense<0.000000e+00> : vector<2x8xf32>
    %101 = vector.multi_reduction <add>, %100, %cst_25 [2] : vector<2x8x8xf32> to vector<2x8xf32>
    %102 = vector.shape_cast %101 : vector<2x8xf32> to vector<2x8x1xf32>
    %103 = tpu.reciprocal %102 {approx = true} : vector<2x8x1xf32> -> vector<2x8x1xf32>
    %104 = vector.broadcast %103 : vector<2x8x1xf32> to vector<2x8x8xf32>
    %105 = arith.mulf %100, %104 : vector<2x8x8xf32>
    %106 = arith.truncf %105 : vector<2x8x8xf32> to vector<2x8x8xbf16>
    "tpu.trace_start"() <{level = 10 : i32, message = "bqk,bkd->bqd"}> : () -> ()
    %cst_26 = arith.constant dense<0.000000e+00> : vector<2x8x8xf32>
    %107 = tpu.matmul %106, %92, %cst_26 {dimension_numbers = #tpu.dot_dimension_numbers<[2], [1], [1], [2], [0, 0, 0, 1, 1, 2], [0], [0]>} : vector<2x8x8xbf16>, vector<2x8x8xbf16>, vector<2x8x8xf32> -> vector<2x8x8xf32>
    "tpu.trace_stop"() : () -> ()
    %108 = vector.shape_cast %107 : vector<2x8x8xf32> to vector<16x8xf32>
    %109 = tpu.concatenate %33, %58, %83, %108 in 1 : vector<16x8xf32>, vector<16x8xf32>, vector<16x8xf32>, vector<16x8xf32> -> vector<16x32xf32>
    %110 = arith.truncf %109 : vector<16x32xf32> to vector<16x32xbf16>
    %c0_27 = arith.constant 0 : index
    %c0_28 = arith.constant 0 : index
    %c0_29 = arith.constant 0 : index
    %111 = vector.load %arg3[%c0_27, %c0_28, %c0_29] : memref<2x32x32xbf16, #tpu.memory_space<vmem>>, vector<1x32x32xbf16>
    %112 = vector.shape_cast %111 : vector<1x32x32xbf16> to vector<32x32xbf16>
    %cst_30 = arith.constant dense<0.000000e+00> : vector<16x32xf32>
    %113 = tpu.matmul %110, %112, %cst_30 {dimension_numbers = #tpu.dot_dimension_numbers<[1], [0], [0], [1], [0, 0, 1, 1], [], []>} : vector<16x32xbf16>, vector<32x32xbf16>, vector<16x32xf32> -> vector<16x32xf32>
    %c0_31 = arith.constant 0 : index
    %c0_32 = arith.constant 0 : index
    %c0_33 = arith.constant 0 : index
    %114 = vector.load %arg4[%c0_31, %c0_32, %c0_33] : memref<2x1x32xf32, #tpu.memory_space<vmem>>, vector<1x1x32xf32>
    %115 = vector.shape_cast %114 : vector<1x1x32xf32> to vector<1x32xf32>
    %116 = vector.broadcast %115 : vector<1x32xf32> to vector<16x32xf32>
    %117 = arith.addf %113, %116 : vector<16x32xf32>
    %118 = arith.addf %0, %117 : vector<16x32xf32>
    %c0_34 = arith.constant 0 : index
    %c0_35 = arith.constant 0 : index
    %c0_36 = arith.constant 0 : index
    %119 = vector.load %arg5[%c0_34, %c0_35, %c0_36] : memref<2x1x32xf32, #tpu.memory_space<vmem>>, vector<1x1x32xf32>
    %120 = vector.shape_cast %119 : vector<1x1x32xf32> to vector<1x32xf32>
    %c0_37 = arith.constant 0 : index
    %c0_38 = arith.constant 0 : index
    %c0_39 = arith.constant 0 : index
    %121 = vector.load %arg6[%c0_37, %c0_38, %c0_39] : memref<2x1x32xf32, #tpu.memory_space<vmem>>, vector<1x1x32xf32>
    %122 = vector.shape_cast %121 : vector<1x1x32xf32> to vector<1x32xf32>
    %cst_40 = arith.constant dense<0.000000e+00> : vector<16xf32>
    %123 = vector.multi_reduction <add>, %118, %cst_40 [1] : vector<16x32xf32> to vector<16xf32>
    %124 = vector.shape_cast %123 : vector<16xf32> to vector<16x1xf32>
    %cst_41 = arith.constant 3.200000e+01 : f32
    %125 = vector.broadcast %cst_41 : f32 to vector<16x1xf32>
    %126 = arith.divf %124, %125 : vector<16x1xf32>
    %127 = vector.broadcast %126 : vector<16x1xf32> to vector<16x32xf32>
    %128 = arith.subf %118, %127 : vector<16x32xf32>
    %129 = arith.mulf %128, %128 : vector<16x32xf32>
    %cst_42 = arith.constant dense<0.000000e+00> : vector<16xf32>
    %130 = vector.multi_reduction <add>, %129, %cst_42 [1] : vector<16x32xf32> to vector<16xf32>
    %131 = vector.shape_cast %130 : vector<16xf32> to vector<16x1xf32>
    %cst_43 = arith.constant 3.200000e+01 : f32
    %132 = vector.broadcast %cst_43 : f32 to vector<16x1xf32>
    %133 = arith.divf %131, %132 : vector<16x1xf32>
    %134 = vector.broadcast %126 : vector<16x1xf32> to vector<16x32xf32>
    %135 = arith.subf %118, %134 : vector<16x32xf32>
    %cst_44 = arith.constant 9.99999974E-6 : f32
    %136 = vector.broadcast %cst_44 : f32 to vector<16x1xf32>
    %137 = arith.addf %133, %136 : vector<16x1xf32>
    %138 = math.rsqrt %137 : vector<16x1xf32>
    %139 = vector.broadcast %138 : vector<16x1xf32> to vector<16x32xf32>
    %140 = arith.mulf %135, %139 : vector<16x32xf32>
    %141 = vector.broadcast %120 : vector<1x32xf32> to vector<16x32xf32>
    %142 = arith.mulf %140, %141 : vector<16x32xf32>
    %143 = vector.broadcast %122 : vector<1x32xf32> to vector<16x32xf32>
    %144 = arith.addf %142, %143 : vector<16x32xf32>
    %145 = arith.truncf %144 : vector<16x32xf32> to vector<16x32xbf16>
    %c0_45 = arith.constant 0 : index
    %c0_46 = arith.constant 0 : index
    %c0_47 = arith.constant 0 : index
    %146 = vector.load %arg7[%c0_45, %c0_46, %c0_47] : memref<2x32x128xbf16, #tpu.memory_space<vmem>>, vector<1x32x128xbf16>
    %147 = vector.shape_cast %146 : vector<1x32x128xbf16> to vector<32x128xbf16>
    %cst_48 = arith.constant dense<0.000000e+00> : vector<16x128xf32>
    %148 = tpu.matmul %145, %147, %cst_48 {dimension_numbers = #tpu.dot_dimension_numbers<[1], [0], [0], [1], [0, 0, 1, 1], [], []>} : vector<16x32xbf16>, vector<32x128xbf16>, vector<16x128xf32> -> vector<16x128xf32>
    %c0_49 = arith.constant 0 : index
    %c0_50 = arith.constant 0 : index
    %c0_51 = arith.constant 0 : index
    %149 = vector.load %arg8[%c0_49, %c0_50, %c0_51] : memref<2x1x128xf32, #tpu.memory_space<vmem>>, vector<1x1x128xf32>
    %150 = vector.shape_cast %149 : vector<1x1x128xf32> to vector<1x128xf32>
    %151 = vector.broadcast %150 : vector<1x128xf32> to vector<16x128xf32>
    %152 = arith.addf %148, %151 : vector<16x128xf32>
    %cst_52 = arith.constant 0.000000e+00 : f32
    %153 = vector.broadcast %cst_52 : f32 to vector<16x128xf32>
    %154 = arith.maximumf %152, %153 : vector<16x128xf32>
    %155 = arith.truncf %154 : vector<16x128xf32> to vector<16x128xbf16>
    %c0_53 = arith.constant 0 : index
    %c0_54 = arith.constant 0 : index
    %c0_55 = arith.constant 0 : index
    %156 = vector.load %arg9[%c0_53, %c0_54, %c0_55] : memref<2x128x32xbf16, #tpu.memory_space<vmem>>, vector<1x128x32xbf16>
    %157 = vector.shape_cast %156 : vector<1x128x32xbf16> to vector<128x32xbf16>
    %cst_56 = arith.constant dense<0.000000e+00> : vector<16x32xf32>
    %158 = tpu.matmul %155, %157, %cst_56 {dimension_numbers = #tpu.dot_dimension_numbers<[1], [0], [0], [1], [0, 0, 1, 1], [], []>} : vector<16x128xbf16>, vector<128x32xbf16>, vector<16x32xf32> -> vector<16x32xf32>
    %c0_57 = arith.constant 0 : index
    %c0_58 = arith.constant 0 : index
    %c0_59 = arith.constant 0 : index
    %159 = vector.load %arg10[%c0_57, %c0_58, %c0_59] : memref<2x1x32xf32, #tpu.memory_space<vmem>>, vector<1x1x32xf32>
    %160 = vector.shape_cast %159 : vector<1x1x32xf32> to vector<1x32xf32>
    %161 = vector.broadcast %160 : vector<1x32xf32> to vector<16x32xf32>
    %162 = arith.addf %158, %161 : vector<16x32xf32>
    %163 = arith.addf %144, %162 : vector<16x32xf32>
    %c0_60 = arith.constant 0 : index
    %c0_61 = arith.constant 0 : index
    %c0_62 = arith.constant 0 : index
    %164 = vector.load %arg11[%c0_60, %c0_61, %c0_62] : memref<2x1x32xf32, #tpu.memory_space<vmem>>, vector<1x1x32xf32>
    %165 = vector.shape_cast %164 : vector<1x1x32xf32> to vector<1x32xf32>
    %c0_63 = arith.constant 0 : index
    %c0_64 = arith.constant 0 : index
    %c0_65 = arith.constant 0 : index
    %166 = vector.load %arg12[%c0_63, %c0_64, %c0_65] : memref<2x1x32xf32, #tpu.memory_space<vmem>>, vector<1x1x32xf32>
    %167 = vector.shape_cast %166 : vector<1x1x32xf32> to vector<1x32xf32>
    %cst_66 = arith.constant dense<0.000000e+00> : vector<16xf32>
    %168 = vector.multi_reduction <add>, %163, %cst_66 [1] : vector<16x32xf32> to vector<16xf32>
    %169 = vector.shape_cast %168 : vector<16xf32> to vector<16x1xf32>
    %cst_67 = arith.constant 3.200000e+01 : f32
    %170 = vector.broadcast %cst_67 : f32 to vector<16x1xf32>
    %171 = arith.divf %169, %170 : vector<16x1xf32>
    %172 = vector.broadcast %171 : vector<16x1xf32> to vector<16x32xf32>
    %173 = arith.subf %163, %172 : vector<16x32xf32>
    %174 = arith.mulf %173, %173 : vector<16x32xf32>
    %cst_68 = arith.constant dense<0.000000e+00> : vector<16xf32>
    %175 = vector.multi_reduction <add>, %174, %cst_68 [1] : vector<16x32xf32> to vector<16xf32>
    %176 = vector.shape_cast %175 : vector<16xf32> to vector<16x1xf32>
    %cst_69 = arith.constant 3.200000e+01 : f32
    %177 = vector.broadcast %cst_69 : f32 to vector<16x1xf32>
    %178 = arith.divf %176, %177 : vector<16x1xf32>
    %179 = vector.broadcast %171 : vector<16x1xf32> to vector<16x32xf32>
    %180 = arith.subf %163, %179 : vector<16x32xf32>
    %cst_70 = arith.constant 9.99999974E-6 : f32
    %181 = vector.broadcast %cst_70 : f32 to vector<16x1xf32>
    %182 = arith.addf %178, %181 : vector<16x1xf32>
    %183 = math.rsqrt %182 : vector<16x1xf32>
    %184 = vector.broadcast %183 : vector<16x1xf32> to vector<16x32xf32>
    %185 = arith.mulf %180, %184 : vector<16x32xf32>
    %186 = vector.broadcast %165 : vector<1x32xf32> to vector<16x32xf32>
    %187 = arith.mulf %185, %186 : vector<16x32xf32>
    %188 = vector.broadcast %167 : vector<1x32xf32> to vector<16x32xf32>
    %189 = arith.addf %187, %188 : vector<16x32xf32>
    %190 = arith.truncf %189 : vector<16x32xf32> to vector<16x32xbf16>
    %c1 = arith.constant 1 : index
    %c0_71 = arith.constant 0 : index
    %c0_72 = arith.constant 0 : index
    %191 = vector.load %arg1[%c1, %c0_71, %c0_72] : memref<2x32x96xbf16, #tpu.memory_space<vmem>>, vector<1x32x96xbf16>
    %192 = vector.shape_cast %191 : vector<1x32x96xbf16> to vector<32x96xbf16>
    %cst_73 = arith.constant dense<0.000000e+00> : vector<16x96xf32>
    %193 = tpu.matmul %190, %192, %cst_73 {dimension_numbers = #tpu.dot_dimension_numbers<[1], [0], [0], [1], [0, 0, 1, 1], [], []>} : vector<16x32xbf16>, vector<32x96xbf16>, vector<16x96xf32> -> vector<16x96xf32>
    %c1_74 = arith.constant 1 : index
    %c0_75 = arith.constant 0 : index
    %c0_76 = arith.constant 0 : index
    %194 = vector.load %arg2[%c1_74, %c0_75, %c0_76] : memref<2x1x96xf32, #tpu.memory_space<vmem>>, vector<1x1x96xf32>
    %195 = vector.shape_cast %194 : vector<1x1x96xf32> to vector<1x96xf32>
    %196 = vector.broadcast %195 : vector<1x96xf32> to vector<16x96xf32>
    %197 = arith.addf %193, %196 : vector<16x96xf32>
    %198 = vector.extract_strided_slice %197 {offsets = [0, 0], sizes = [16, 8], strides = [1, 1]} : vector<16x96xf32> to vector<16x8xf32>
    %199 = vector.extract_strided_slice %197 {offsets = [0, 32], sizes = [16, 8], strides = [1, 1]} : vector<16x96xf32> to vector<16x8xf32>
    %200 = vector.extract_strided_slice %197 {offsets = [0, 64], sizes = [16, 8], strides = [1, 1]} : vector<16x96xf32> to vector<16x8xf32>
    %201 = vector.shape_cast %198 : vector<16x8xf32> to vector<2x8x8xf32>
    %202 = arith.truncf %201 : vector<2x8x8xf32> to vector<2x8x8xbf16>
    %203 = vector.shape_cast %199 : vector<16x8xf32> to vector<2x8x8xf32>
    %204 = arith.truncf %203 : vector<2x8x8xf32> to vector<2x8x8xbf16>
    %205 = vector.shape_cast %200 : vector<16x8xf32> to vector<2x8x8xf32>
    %206 = arith.truncf %205 : vector<2x8x8xf32> to vector<2x8x8xbf16>
    "tpu.trace_start"() <{level = 10 : i32, message = "bqd,bkd->bqk"}> : () -> ()
    %cst_77 = arith.constant dense<0.000000e+00> : vector<2x8x8xf32>
    %207 = tpu.matmul %202, %204, %cst_77 {dimension_numbers = #tpu.dot_dimension_numbers<[2], [2], [1], [1], [0, 0, 0, 1, 1, 1], [0], [0]>} : vector<2x8x8xbf16>, vector<2x8x8xbf16>, vector<2x8x8xf32> -> vector<2x8x8xf32>
    "tpu.trace_stop"() : () -> ()
    %cst_78 = arith.constant 0.353553385 : f32
    %208 = vector.broadcast %cst_78 : f32 to vector<2x8x8xf32>
    %209 = arith.mulf %207, %208 : vector<2x8x8xf32>
    %cst_79 = arith.constant dense<0xFF800000> : vector<2x8xf32>
    %210 = vector.multi_reduction <maximumf>, %209, %cst_79 [2] : vector<2x8x8xf32> to vector<2x8xf32>
    %211 = vector.shape_cast %210 : vector<2x8xf32> to vector<2x8x1xf32>
    %212 = vector.broadcast %211 : vector<2x8x1xf32> to vector<2x8x8xf32>
    %213 = arith.subf %209, %212 : vector<2x8x8xf32>
    %214 = math.exp %213 : vector<2x8x8xf32>
    %cst_80 = arith.constant dense<0.000000e+00> : vector<2x8xf32>
    %215 = vector.multi_reduction <add>, %214, %cst_80 [2] : vector<2x8x8xf32> to vector<2x8xf32>
    %216 = vector.shape_cast %215 : vector<2x8xf32> to vector<2x8x1xf32>
    %217 = tpu.reciprocal %216 {approx = true} : vector<2x8x1xf32> -> vector<2x8x1xf32>
    %218 = vector.broadcast %217 : vector<2x8x1xf32> to vector<2x8x8xf32>
    %219 = arith.mulf %214, %218 : vector<2x8x8xf32>
    %220 = arith.truncf %219 : vector<2x8x8xf32> to vector<2x8x8xbf16>
    "tpu.trace_start"() <{level = 10 : i32, message = "bqk,bkd->bqd"}> : () -> ()
    %cst_81 = arith.constant dense<0.000000e+00> : vector<2x8x8xf32>
    %221 = tpu.matmul %220, %206, %cst_81 {dimension_numbers = #tpu.dot_dimension_numbers<[2], [1], [1], [2], [0, 0, 0, 1, 1, 2], [0], [0]>} : vector<2x8x8xbf16>, vector<2x8x8xbf16>, vector<2x8x8xf32> -> vector<2x8x8xf32>
    "tpu.trace_stop"() : () -> ()
    %222 = vector.shape_cast %221 : vector<2x8x8xf32> to vector<16x8xf32>
    %223 = vector.extract_strided_slice %197 {offsets = [0, 8], sizes = [16, 8], strides = [1, 1]} : vector<16x96xf32> to vector<16x8xf32>
    %224 = vector.extract_strided_slice %197 {offsets = [0, 40], sizes = [16, 8], strides = [1, 1]} : vector<16x96xf32> to vector<16x8xf32>
    %225 = vector.extract_strided_slice %197 {offsets = [0, 72], sizes = [16, 8], strides = [1, 1]} : vector<16x96xf32> to vector<16x8xf32>
    %226 = vector.shape_cast %223 : vector<16x8xf32> to vector<2x8x8xf32>
    %227 = arith.truncf %226 : vector<2x8x8xf32> to vector<2x8x8xbf16>
    %228 = vector.shape_cast %224 : vector<16x8xf32> to vector<2x8x8xf32>
    %229 = arith.truncf %228 : vector<2x8x8xf32> to vector<2x8x8xbf16>
    %230 = vector.shape_cast %225 : vector<16x8xf32> to vector<2x8x8xf32>
    %231 = arith.truncf %230 : vector<2x8x8xf32> to vector<2x8x8xbf16>
    "tpu.trace_start"() <{level = 10 : i32, message = "bqd,bkd->bqk"}> : () -> ()
    %cst_82 = arith.constant dense<0.000000e+00> : vector<2x8x8xf32>
    %232 = tpu.matmul %227, %229, %cst_82 {dimension_numbers = #tpu.dot_dimension_numbers<[2], [2], [1], [1], [0, 0, 0, 1, 1, 1], [0], [0]>} : vector<2x8x8xbf16>, vector<2x8x8xbf16>, vector<2x8x8xf32> -> vector<2x8x8xf32>
    "tpu.trace_stop"() : () -> ()
    %cst_83 = arith.constant 0.353553385 : f32
    %233 = vector.broadcast %cst_83 : f32 to vector<2x8x8xf32>
    %234 = arith.mulf %232, %233 : vector<2x8x8xf32>
    %cst_84 = arith.constant dense<0xFF800000> : vector<2x8xf32>
    %235 = vector.multi_reduction <maximumf>, %234, %cst_84 [2] : vector<2x8x8xf32> to vector<2x8xf32>
    %236 = vector.shape_cast %235 : vector<2x8xf32> to vector<2x8x1xf32>
    %237 = vector.broadcast %236 : vector<2x8x1xf32> to vector<2x8x8xf32>
    %238 = arith.subf %234, %237 : vector<2x8x8xf32>
    %239 = math.exp %238 : vector<2x8x8xf32>
    %cst_85 = arith.constant dense<0.000000e+00> : vector<2x8xf32>
    %240 = vector.multi_reduction <add>, %239, %cst_85 [2] : vector<2x8x8xf32> to vector<2x8xf32>
    %241 = vector.shape_cast %240 : vector<2x8xf32> to vector<2x8x1xf32>
    %242 = tpu.reciprocal %241 {approx = true} : vector<2x8x1xf32> -> vector<2x8x1xf32>
    %243 = vector.broadcast %242 : vector<2x8x1xf32> to vector<2x8x8xf32>
    %244 = arith.mulf %239, %243 : vector<2x8x8xf32>
    %245 = arith.truncf %244 : vector<2x8x8xf32> to vector<2x8x8xbf16>
    "tpu.trace_start"() <{level = 10 : i32, message = "bqk,bkd->bqd"}> : () -> ()
    %cst_86 = arith.constant dense<0.000000e+00> : vector<2x8x8xf32>
    %246 = tpu.matmul %245, %231, %cst_86 {dimension_numbers = #tpu.dot_dimension_numbers<[2], [1], [1], [2], [0, 0, 0, 1, 1, 2], [0], [0]>} : vector<2x8x8xbf16>, vector<2x8x8xbf16>, vector<2x8x8xf32> -> vector<2x8x8xf32>
    "tpu.trace_stop"() : () -> ()
    %247 = vector.shape_cast %246 : vector<2x8x8xf32> to vector<16x8xf32>
    %248 = vector.extract_strided_slice %197 {offsets = [0, 16], sizes = [16, 8], strides = [1, 1]} : vector<16x96xf32> to vector<16x8xf32>
    %249 = vector.extract_strided_slice %197 {offsets = [0, 48], sizes = [16, 8], strides = [1, 1]} : vector<16x96xf32> to vector<16x8xf32>
    %250 = vector.extract_strided_slice %197 {offsets = [0, 80], sizes = [16, 8], strides = [1, 1]} : vector<16x96xf32> to vector<16x8xf32>
    %251 = vector.shape_cast %248 : vector<16x8xf32> to vector<2x8x8xf32>
    %252 = arith.truncf %251 : vector<2x8x8xf32> to vector<2x8x8xbf16>
    %253 = vector.shape_cast %249 : vector<16x8xf32> to vector<2x8x8xf32>
    %254 = arith.truncf %253 : vector<2x8x8xf32> to vector<2x8x8xbf16>
    %255 = vector.shape_cast %250 : vector<16x8xf32> to vector<2x8x8xf32>
    %256 = arith.truncf %255 : vector<2x8x8xf32> to vector<2x8x8xbf16>
    "tpu.trace_start"() <{level = 10 : i32, message = "bqd,bkd->bqk"}> : () -> ()
    %cst_87 = arith.constant dense<0.000000e+00> : vector<2x8x8xf32>
    %257 = tpu.matmul %252, %254, %cst_87 {dimension_numbers = #tpu.dot_dimension_numbers<[2], [2], [1], [1], [0, 0, 0, 1, 1, 1], [0], [0]>} : vector<2x8x8xbf16>, vector<2x8x8xbf16>, vector<2x8x8xf32> -> vector<2x8x8xf32>
    "tpu.trace_stop"() : () -> ()
    %cst_88 = arith.constant 0.353553385 : f32
    %258 = vector.broadcast %cst_88 : f32 to vector<2x8x8xf32>
    %259 = arith.mulf %257, %258 : vector<2x8x8xf32>
    %cst_89 = arith.constant dense<0xFF800000> : vector<2x8xf32>
    %260 = vector.multi_reduction <maximumf>, %259, %cst_89 [2] : vector<2x8x8xf32> to vector<2x8xf32>
    %261 = vector.shape_cast %260 : vector<2x8xf32> to vector<2x8x1xf32>
    %262 = vector.broadcast %261 : vector<2x8x1xf32> to vector<2x8x8xf32>
    %263 = arith.subf %259, %262 : vector<2x8x8xf32>
    %264 = math.exp %263 : vector<2x8x8xf32>
    %cst_90 = arith.constant dense<0.000000e+00> : vector<2x8xf32>
    %265 = vector.multi_reduction <add>, %264, %cst_90 [2] : vector<2x8x8xf32> to vector<2x8xf32>
    %266 = vector.shape_cast %265 : vector<2x8xf32> to vector<2x8x1xf32>
    %267 = tpu.reciprocal %266 {approx = true} : vector<2x8x1xf32> -> vector<2x8x1xf32>
    %268 = vector.broadcast %267 : vector<2x8x1xf32> to vector<2x8x8xf32>
    %269 = arith.mulf %264, %268 : vector<2x8x8xf32>
    %270 = arith.truncf %269 : vector<2x8x8xf32> to vector<2x8x8xbf16>
    "tpu.trace_start"() <{level = 10 : i32, message = "bqk,bkd->bqd"}> : () -> ()
    %cst_91 = arith.constant dense<0.000000e+00> : vector<2x8x8xf32>
    %271 = tpu.matmul %270, %256, %cst_91 {dimension_numbers = #tpu.dot_dimension_numbers<[2], [1], [1], [2], [0, 0, 0, 1, 1, 2], [0], [0]>} : vector<2x8x8xbf16>, vector<2x8x8xbf16>, vector<2x8x8xf32> -> vector<2x8x8xf32>
    "tpu.trace_stop"() : () -> ()
    %272 = vector.shape_cast %271 : vector<2x8x8xf32> to vector<16x8xf32>
    %273 = vector.extract_strided_slice %197 {offsets = [0, 24], sizes = [16, 8], strides = [1, 1]} : vector<16x96xf32> to vector<16x8xf32>
    %274 = vector.extract_strided_slice %197 {offsets = [0, 56], sizes = [16, 8], strides = [1, 1]} : vector<16x96xf32> to vector<16x8xf32>
    %275 = vector.extract_strided_slice %197 {offsets = [0, 88], sizes = [16, 8], strides = [1, 1]} : vector<16x96xf32> to vector<16x8xf32>
    %276 = vector.shape_cast %273 : vector<16x8xf32> to vector<2x8x8xf32>
    %277 = arith.truncf %276 : vector<2x8x8xf32> to vector<2x8x8xbf16>
    %278 = vector.shape_cast %274 : vector<16x8xf32> to vector<2x8x8xf32>
    %279 = arith.truncf %278 : vector<2x8x8xf32> to vector<2x8x8xbf16>
    %280 = vector.shape_cast %275 : vector<16x8xf32> to vector<2x8x8xf32>
    %281 = arith.truncf %280 : vector<2x8x8xf32> to vector<2x8x8xbf16>
    "tpu.trace_start"() <{level = 10 : i32, message = "bqd,bkd->bqk"}> : () -> ()
    %cst_92 = arith.constant dense<0.000000e+00> : vector<2x8x8xf32>
    %282 = tpu.matmul %277, %279, %cst_92 {dimension_numbers = #tpu.dot_dimension_numbers<[2], [2], [1], [1], [0, 0, 0, 1, 1, 1], [0], [0]>} : vector<2x8x8xbf16>, vector<2x8x8xbf16>, vector<2x8x8xf32> -> vector<2x8x8xf32>
    "tpu.trace_stop"() : () -> ()
    %cst_93 = arith.constant 0.353553385 : f32
    %283 = vector.broadcast %cst_93 : f32 to vector<2x8x8xf32>
    %284 = arith.mulf %282, %283 : vector<2x8x8xf32>
    %cst_94 = arith.constant dense<0xFF800000> : vector<2x8xf32>
    %285 = vector.multi_reduction <maximumf>, %284, %cst_94 [2] : vector<2x8x8xf32> to vector<2x8xf32>
    %286 = vector.shape_cast %285 : vector<2x8xf32> to vector<2x8x1xf32>
    %287 = vector.broadcast %286 : vector<2x8x1xf32> to vector<2x8x8xf32>
    %288 = arith.subf %284, %287 : vector<2x8x8xf32>
    %289 = math.exp %288 : vector<2x8x8xf32>
    %cst_95 = arith.constant dense<0.000000e+00> : vector<2x8xf32>
    %290 = vector.multi_reduction <add>, %289, %cst_95 [2] : vector<2x8x8xf32> to vector<2x8xf32>
    %291 = vector.shape_cast %290 : vector<2x8xf32> to vector<2x8x1xf32>
    %292 = tpu.reciprocal %291 {approx = true} : vector<2x8x1xf32> -> vector<2x8x1xf32>
    %293 = vector.broadcast %292 : vector<2x8x1xf32> to vector<2x8x8xf32>
    %294 = arith.mulf %289, %293 : vector<2x8x8xf32>
    %295 = arith.truncf %294 : vector<2x8x8xf32> to vector<2x8x8xbf16>
    "tpu.trace_start"() <{level = 10 : i32, message = "bqk,bkd->bqd"}> : () -> ()
    %cst_96 = arith.constant dense<0.000000e+00> : vector<2x8x8xf32>
    %296 = tpu.matmul %295, %281, %cst_96 {dimension_numbers = #tpu.dot_dimension_numbers<[2], [1], [1], [2], [0, 0, 0, 1, 1, 2], [0], [0]>} : vector<2x8x8xbf16>, vector<2x8x8xbf16>, vector<2x8x8xf32> -> vector<2x8x8xf32>
    "tpu.trace_stop"() : () -> ()
    %297 = vector.shape_cast %296 : vector<2x8x8xf32> to vector<16x8xf32>
    %298 = tpu.concatenate %222, %247, %272, %297 in 1 : vector<16x8xf32>, vector<16x8xf32>, vector<16x8xf32>, vector<16x8xf32> -> vector<16x32xf32>
    %299 = arith.truncf %298 : vector<16x32xf32> to vector<16x32xbf16>
    %c1_97 = arith.constant 1 : index
    %c0_98 = arith.constant 0 : index
    %c0_99 = arith.constant 0 : index
    %300 = vector.load %arg3[%c1_97, %c0_98, %c0_99] : memref<2x32x32xbf16, #tpu.memory_space<vmem>>, vector<1x32x32xbf16>
    %301 = vector.shape_cast %300 : vector<1x32x32xbf16> to vector<32x32xbf16>
    %cst_100 = arith.constant dense<0.000000e+00> : vector<16x32xf32>
    %302 = tpu.matmul %299, %301, %cst_100 {dimension_numbers = #tpu.dot_dimension_numbers<[1], [0], [0], [1], [0, 0, 1, 1], [], []>} : vector<16x32xbf16>, vector<32x32xbf16>, vector<16x32xf32> -> vector<16x32xf32>
    %c1_101 = arith.constant 1 : index
    %c0_102 = arith.constant 0 : index
    %c0_103 = arith.constant 0 : index
    %303 = vector.load %arg4[%c1_101, %c0_102, %c0_103] : memref<2x1x32xf32, #tpu.memory_space<vmem>>, vector<1x1x32xf32>
    %304 = vector.shape_cast %303 : vector<1x1x32xf32> to vector<1x32xf32>
    %305 = vector.broadcast %304 : vector<1x32xf32> to vector<16x32xf32>
    %306 = arith.addf %302, %305 : vector<16x32xf32>
    %307 = arith.addf %189, %306 : vector<16x32xf32>
    %c1_104 = arith.constant 1 : index
    %c0_105 = arith.constant 0 : index
    %c0_106 = arith.constant 0 : index
    %308 = vector.load %arg5[%c1_104, %c0_105, %c0_106] : memref<2x1x32xf32, #tpu.memory_space<vmem>>, vector<1x1x32xf32>
    %309 = vector.shape_cast %308 : vector<1x1x32xf32> to vector<1x32xf32>
    %c1_107 = arith.constant 1 : index
    %c0_108 = arith.constant 0 : index
    %c0_109 = arith.constant 0 : index
    %310 = vector.load %arg6[%c1_107, %c0_108, %c0_109] : memref<2x1x32xf32, #tpu.memory_space<vmem>>, vector<1x1x32xf32>
    %311 = vector.shape_cast %310 : vector<1x1x32xf32> to vector<1x32xf32>
    %cst_110 = arith.constant dense<0.000000e+00> : vector<16xf32>
    %312 = vector.multi_reduction <add>, %307, %cst_110 [1] : vector<16x32xf32> to vector<16xf32>
    %313 = vector.shape_cast %312 : vector<16xf32> to vector<16x1xf32>
    %cst_111 = arith.constant 3.200000e+01 : f32
    %314 = vector.broadcast %cst_111 : f32 to vector<16x1xf32>
    %315 = arith.divf %313, %314 : vector<16x1xf32>
    %316 = vector.broadcast %315 : vector<16x1xf32> to vector<16x32xf32>
    %317 = arith.subf %307, %316 : vector<16x32xf32>
    %318 = arith.mulf %317, %317 : vector<16x32xf32>
    %cst_112 = arith.constant dense<0.000000e+00> : vector<16xf32>
    %319 = vector.multi_reduction <add>, %318, %cst_112 [1] : vector<16x32xf32> to vector<16xf32>
    %320 = vector.shape_cast %319 : vector<16xf32> to vector<16x1xf32>
    %cst_113 = arith.constant 3.200000e+01 : f32
    %321 = vector.broadcast %cst_113 : f32 to vector<16x1xf32>
    %322 = arith.divf %320, %321 : vector<16x1xf32>
    %323 = vector.broadcast %315 : vector<16x1xf32> to vector<16x32xf32>
    %324 = arith.subf %307, %323 : vector<16x32xf32>
    %cst_114 = arith.constant 9.99999974E-6 : f32
    %325 = vector.broadcast %cst_114 : f32 to vector<16x1xf32>
    %326 = arith.addf %322, %325 : vector<16x1xf32>
    %327 = math.rsqrt %326 : vector<16x1xf32>
    %328 = vector.broadcast %327 : vector<16x1xf32> to vector<16x32xf32>
    %329 = arith.mulf %324, %328 : vector<16x32xf32>
    %330 = vector.broadcast %309 : vector<1x32xf32> to vector<16x32xf32>
    %331 = arith.mulf %329, %330 : vector<16x32xf32>
    %332 = vector.broadcast %311 : vector<1x32xf32> to vector<16x32xf32>
    %333 = arith.addf %331, %332 : vector<16x32xf32>
    %334 = arith.truncf %333 : vector<16x32xf32> to vector<16x32xbf16>
    %c1_115 = arith.constant 1 : index
    %c0_116 = arith.constant 0 : index
    %c0_117 = arith.constant 0 : index
    %335 = vector.load %arg7[%c1_115, %c0_116, %c0_117] : memref<2x32x128xbf16, #tpu.memory_space<vmem>>, vector<1x32x128xbf16>
    %336 = vector.shape_cast %335 : vector<1x32x128xbf16> to vector<32x128xbf16>
    %cst_118 = arith.constant dense<0.000000e+00> : vector<16x128xf32>
    %337 = tpu.matmul %334, %336, %cst_118 {dimension_numbers = #tpu.dot_dimension_numbers<[1], [0], [0], [1], [0, 0, 1, 1], [], []>} : vector<16x32xbf16>, vector<32x128xbf16>, vector<16x128xf32> -> vector<16x128xf32>
    %c1_119 = arith.constant 1 : index
    %c0_120 = arith.constant 0 : index
    %c0_121 = arith.constant 0 : index
    %338 = vector.load %arg8[%c1_119, %c0_120, %c0_121] : memref<2x1x128xf32, #tpu.memory_space<vmem>>, vector<1x1x128xf32>
    %339 = vector.shape_cast %338 : vector<1x1x128xf32> to vector<1x128xf32>
    %340 = vector.broadcast %339 : vector<1x128xf32> to vector<16x128xf32>
    %341 = arith.addf %337, %340 : vector<16x128xf32>
    %cst_122 = arith.constant 0.000000e+00 : f32
    %342 = vector.broadcast %cst_122 : f32 to vector<16x128xf32>
    %343 = arith.maximumf %341, %342 : vector<16x128xf32>
    %344 = arith.truncf %343 : vector<16x128xf32> to vector<16x128xbf16>
    %c1_123 = arith.constant 1 : index
    %c0_124 = arith.constant 0 : index
    %c0_125 = arith.constant 0 : index
    %345 = vector.load %arg9[%c1_123, %c0_124, %c0_125] : memref<2x128x32xbf16, #tpu.memory_space<vmem>>, vector<1x128x32xbf16>
    %346 = vector.shape_cast %345 : vector<1x128x32xbf16> to vector<128x32xbf16>
    %cst_126 = arith.constant dense<0.000000e+00> : vector<16x32xf32>
    %347 = tpu.matmul %344, %346, %cst_126 {dimension_numbers = #tpu.dot_dimension_numbers<[1], [0], [0], [1], [0, 0, 1, 1], [], []>} : vector<16x128xbf16>, vector<128x32xbf16>, vector<16x32xf32> -> vector<16x32xf32>
    %c1_127 = arith.constant 1 : index
    %c0_128 = arith.constant 0 : index
    %c0_129 = arith.constant 0 : index
    %348 = vector.load %arg10[%c1_127, %c0_128, %c0_129] : memref<2x1x32xf32, #tpu.memory_space<vmem>>, vector<1x1x32xf32>
    %349 = vector.shape_cast %348 : vector<1x1x32xf32> to vector<1x32xf32>
    %350 = vector.broadcast %349 : vector<1x32xf32> to vector<16x32xf32>
    %351 = arith.addf %347, %350 : vector<16x32xf32>
    %352 = arith.addf %333, %351 : vector<16x32xf32>
    %c1_130 = arith.constant 1 : index
    %c0_131 = arith.constant 0 : index
    %c0_132 = arith.constant 0 : index
    %353 = vector.load %arg11[%c1_130, %c0_131, %c0_132] : memref<2x1x32xf32, #tpu.memory_space<vmem>>, vector<1x1x32xf32>
    %354 = vector.shape_cast %353 : vector<1x1x32xf32> to vector<1x32xf32>
    %c1_133 = arith.constant 1 : index
    %c0_134 = arith.constant 0 : index
    %c0_135 = arith.constant 0 : index
    %355 = vector.load %arg12[%c1_133, %c0_134, %c0_135] : memref<2x1x32xf32, #tpu.memory_space<vmem>>, vector<1x1x32xf32>
    %356 = vector.shape_cast %355 : vector<1x1x32xf32> to vector<1x32xf32>
    %cst_136 = arith.constant dense<0.000000e+00> : vector<16xf32>
    %357 = vector.multi_reduction <add>, %352, %cst_136 [1] : vector<16x32xf32> to vector<16xf32>
    %358 = vector.shape_cast %357 : vector<16xf32> to vector<16x1xf32>
    %cst_137 = arith.constant 3.200000e+01 : f32
    %359 = vector.broadcast %cst_137 : f32 to vector<16x1xf32>
    %360 = arith.divf %358, %359 : vector<16x1xf32>
    %361 = vector.broadcast %360 : vector<16x1xf32> to vector<16x32xf32>
    %362 = arith.subf %352, %361 : vector<16x32xf32>
    %363 = arith.mulf %362, %362 : vector<16x32xf32>
    %cst_138 = arith.constant dense<0.000000e+00> : vector<16xf32>
    %364 = vector.multi_reduction <add>, %363, %cst_138 [1] : vector<16x32xf32> to vector<16xf32>
    %365 = vector.shape_cast %364 : vector<16xf32> to vector<16x1xf32>
    %cst_139 = arith.constant 3.200000e+01 : f32
    %366 = vector.broadcast %cst_139 : f32 to vector<16x1xf32>
    %367 = arith.divf %365, %366 : vector<16x1xf32>
    %368 = vector.broadcast %360 : vector<16x1xf32> to vector<16x32xf32>
    %369 = arith.subf %352, %368 : vector<16x32xf32>
    %cst_140 = arith.constant 9.99999974E-6 : f32
    %370 = vector.broadcast %cst_140 : f32 to vector<16x1xf32>
    %371 = arith.addf %367, %370 : vector<16x1xf32>
    %372 = math.rsqrt %371 : vector<16x1xf32>
    %373 = vector.broadcast %372 : vector<16x1xf32> to vector<16x32xf32>
    %374 = arith.mulf %369, %373 : vector<16x32xf32>
    %375 = vector.broadcast %354 : vector<1x32xf32> to vector<16x32xf32>
    %376 = arith.mulf %374, %375 : vector<16x32xf32>
    %377 = vector.broadcast %356 : vector<1x32xf32> to vector<16x32xf32>
    %378 = arith.addf %376, %377 : vector<16x32xf32>
    %379 = arith.truncf %378 : vector<16x32xf32> to vector<16x32xbf16>
    %c0_141 = arith.constant 0 : index
    %c0_142 = arith.constant 0 : index
    %380 = vector.load %arg13[%c0_141, %c0_142] : memref<32x16xbf16, #tpu.memory_space<vmem>>, vector<32x16xbf16>
    %cst_143 = arith.constant dense<0.000000e+00> : vector<16x16xf32>
    %381 = tpu.matmul %379, %380, %cst_143 {dimension_numbers = #tpu.dot_dimension_numbers<[1], [0], [0], [1], [0, 0, 1, 1], [], []>} : vector<16x32xbf16>, vector<32x16xbf16>, vector<16x16xf32> -> vector<16x16xf32>
    %c0_144 = arith.constant 0 : index
    %c0_145 = arith.constant 0 : index
    %382 = vector.load %arg14[%c0_144, %c0_145] : memref<1x16xf32, #tpu.memory_space<vmem>>, vector<1x16xf32>
    %383 = vector.broadcast %382 : vector<1x16xf32> to vector<16x16xf32>
    %384 = arith.addf %381, %383 : vector<16x16xf32>
    %cst_146 = arith.constant dense<0xFF800000> : vector<16xf32>
    %385 = vector.multi_reduction <maximumf>, %384, %cst_146 [1] : vector<16x16xf32> to vector<16xf32>
    %386 = vector.shape_cast %385 : vector<16xf32> to vector<16x1xf32>
    %387 = vector.broadcast %386 : vector<16x1xf32> to vector<16x16xf32>
    %388 = arith.subf %384, %387 : vector<16x16xf32>
    %389 = math.exp %388 : vector<16x16xf32>
    %cst_147 = arith.constant dense<0.000000e+00> : vector<16xf32>
    %390 = vector.multi_reduction <add>, %389, %cst_147 [1] : vector<16x16xf32> to vector<16xf32>
    %391 = vector.shape_cast %390 : vector<16xf32> to vector<16x1xf32>
    %392 = vector.broadcast %391 : vector<16x1xf32> to vector<16x16xf32>
    %393 = arith.divf %389, %392 : vector<16x16xf32>
    %c0_148 = arith.constant 0 : index
    %c0_149 = arith.constant 0 : index
    %394 = vector.load %arg15[%c0_148, %c0_149] : memref<16x16xf32, #tpu.memory_space<vmem>>, vector<16x16xf32>
    tpu.vector_store %arg15[%c0_148, %c0_149], %393 {strides = array<i32>} : memref<16x16xf32, #tpu.memory_space<vmem>>, vector<16x16xf32>,
    return
  }
}

</mosaic_0001>

<bundles_post_ra>
// kernel: transformer_forward.1
= control target key start
LH: loop header
LB: loop body
LE: loop exit
PB: predicated region body
PF: predicated region fallthrough
CT: control target
= control target key end

     0   :  { %v3541_v1 = vmov 0.0   ;;  %vm3542_vm0 = vmmov 0   ;;  %vm78_vm1 = vcmask 261120   ;;  %s4232_s0 = inlined_call_operand.vmem [shape: f32[16,32], index: 0, kind: input, shape index: {}]   ;;  %s4233_s1 = inlined_call_operand.vmem [shape: bf16[2,32,96], index: 1, kind: input, shape index: {}]   ;;  %s4234_s2 = inlined_call_operand.vmem [shape: f32[2,1,96], index: 2, kind: input, shape index: {}]   ;;  %s4235_s3 = inlined_call_operand.vmem [shape: bf16[2,32,32], index: 3, kind: input, shape index: {}]   ;;  %s4236_s4 = inlined_call_operand.vmem [shape: f32[2,1,32], index: 4, kind: input, shape index: {}]   ;;  %s4237_s5 = inlined_call_operand.vmem [shape: f32[2,1,32], index: 5, kind: input, shape index: {}]   ;;  %s4238_s6 = inlined_call_operand.vmem [shape: f32[2,1,32], index: 6, kind: input, shape index: {}]   ;;  %s4239_s7 = inlined_call_operand.vmem [shape: bf16[2,32,128], index: 7, kind: input, shape index: {}]   ;;  %s4240_s8 = inlined_call_operand.vmem [shape: f32[2,1,128], index: 8, kind: input, shape index: {}]   ;;  %s4241_s9 = inlined_call_operand.vmem [shape: bf16[2,128,32], index: 9, kind: input, shape index: {}]   ;;  %s4242_s10 = inlined_call_operand.vmem [shape: f32[2,1,32], index: 10, kind: input, shape index: {}]   ;;  %s4243_s11 = inlined_call_operand.vmem [shape: f32[2,1,32], index: 11, kind: input, shape index: {}]   ;;  %s4244_s12 = inlined_call_operand.vmem [shape: f32[2,1,32], index: 12, kind: input, shape index: {}]   ;;  %s4245_s13 = inlined_call_operand.vmem [shape: bf16[32,16], index: 13, kind: input, shape index: {}]   ;;  %s4246_s14 = inlined_call_operand.vmem [shape: f32[1,16], index: 14, kind: input, shape index: {}]   ;;  %s4247_s15 = inlined_call_operand.hbm [shape: f32[16,16], index: 15, kind: output, shape index: {}]  }
   0x1   :  { %v3399_v0 = vld [vmem:[%s4233_s1] sm:$0xff]   ;;  %3063 = vmatprep.subr.bf16.mxu1 %v3541_v1  ;;  %3077 = vmatprep.subr.bf16.mxu0 %v3541_v1  ;;  %v3400_v2 = vld [vmem:[%s4233_s1 + $0x8] sm:$0xff]  }
   0x2   :  { %3064 = vmatpush3.bf16.msra.mxu1 %v3399_v0  ;;  %3067 = vmatprep.mubr.msk.bf16.mxu1 %vm3542_vm0, %v3541_v1  ;;  %v3652_v3 = vld [vmem:[%s4232_s0] sm:$0xff]  ;;  %v3657_v4 = vld [vmem:[%s4232_s0 + $0x8] sm:$0xff] }
   0x3   :  { %3065 = vmatprep.subr.bf16.mxu1 %v3541_v1  ;;  %3079 = vmatprep.mubr.msk.bf16.mxu0 %vm3542_vm0, %v3541_v1  ;;  %v54_v5 = vpack.c.bf16 %v3657_v4, %v3652_v3 }
   0x6   :  { %3066 = vmatpush3.bf16.msra.mxu1 %v3400_v2 }
   0x7   :  { %3071 = vmatprep.subr.bf16.mxu1 %v3541_v1 }
   0x9   :  { %3068 = vmatmul.mubr.msk.bf16.vlgmr.msra.gmra.mrb[0].mxu1 %vm78_vm1, %v54_v5 }
   0xa   :  { %3073 = vmatprep.mubr.msk.bf16.mxu1 %vm3542_vm0, %v3541_v1 }
   0xb   :  { %20 = vsyncpa [#allocation3], 0  ;;  %v2838_v6 = vld [vmem:[%s4234_s2] ss:$0 sm:$0xff]  ;;  %s3543_s27 = smov 96   ;;  %vm128_vm2 = vcmask 64512  }
   0xc   :  { %s3544_s28 = smov 64   ;;  %s3545_s29 = smov 88   ;;  %vm255_vm3 = vcmask 1043456   ;;  %vm1039_vm4 = vcmask 130048   ;;  %vm1042_vm5 = vcmask 195584  }
   0xd   :  { %s3546_s30 = smov 120   ;;  %s3547_s16 = smov 56  }
   0xe   :  { %s3548_s17 = smov 80   ;;  %s3549_s18 = smov 112  }
   0xf   :  { %s3550_s19 = smov 48   ;;  %s4256_s20 = smov 72  }
  0x10   :  { %s4254_s21 = smov 104   ;;  %s4252_s22 = smov 40  }
  0x11   :  { %s4248_s23 = smov 8   ;;  %s4251_s24 = smov 16  }
  0x12   :  { %s4250_s25 = smov 24  }
  0xdc   :  { %v116_v7 = vpop.f32.mrb[0].mxu1 }
  0xdd   :  { %v117_v8 = vadd.f32 %v2838_v6, %v116_v7  ;;  %v3069_v9 = vpop.f32.mrb[1].mxu1 }
  0xde   :  { %v119_v10 = vpop.f32.mrb[2].mxu1 }
  0xdf   :  { %v3671_v11 = vpack.c.bf16 %v117_v8, %v117_v8  ;;  %v120_v12 = vadd.f32 %v2838_v6, %v119_v10  ;;  %v3070_v13 = vpop.f32.mrb[3].mxu1 }
  0xe1   :  { %126 = vrot.lane.b32.xlu0 %v3671_v11, %s3543_s27  ;;  %v3675_v14 = vpack.c.bf16 %v120_v12, %v120_v12 }
  0xe5   :  { %176 = vrot.lane.b32.xlu0 %v3675_v14, %s3543_s27 }
 0x153   :  { %v127_v15 = vpop.permute.xlu0 %126 }
 0x154   :  { %v133_v16 = vsel %vm128_vm2, %v127_v15, 0 }
 0x155   :  { %3072 = vmatpush3.bf16.xpose.msra.mxu1 %v133_v16 }
 0x156   :  { %3083 = vmatprep.subr.bf16.mxu1 %v3541_v1 }
 0x157   :  { %v177_v17 = vpop.permute.xlu0 %176 }
 0x158   :  { %v182_v18 = vsel %vm128_vm2, %v177_v17, 0 }
 0x159   :  { %3078 = vmatpush3.bf16.xpose.msra.mxu0 %v182_v18 }
 0x15a   :  { %3089 = vmatprep.subr.bf16.mxu0 %v3541_v1 }
 0x15c   :  { %3074 = vmatmul.mubr.msk.bf16.vlgmr.msra.gmra.mrb[4].mxu1 %vm128_vm2, %v3671_v11 }
 0x15d   :  { %3085 = vmatprep.mubr.msk.bf16.mxu1 %vm3542_vm0, %v3541_v1 }
 0x160   :  { %3080 = vmatmul.mubr.msk.bf16.vlgmr.msra.gmra.mrb[0].mxu0 %vm128_vm2, %v3675_v14 }
 0x161   :  { %3091 = vmatprep.mubr.msk.bf16.mxu0 %vm3542_vm0, %v3541_v1 }
 0x22f   :  { %v169_v19 = vpop.f32.mrb[4].mxu1 }
 0x230   :  { %v224_v20 = vmul.f32 0.35355338, %v169_v19  ;;  %v3075_v21 = vpop.f32.mrb[5].mxu1 }
 0x231   :  { %v172_v22 = vpop.f32.mrb[6].mxu1 }
 0x232   :  { %v3076_v23 = vpop.f32.mrb[7].mxu1  ;;  %v226_v24 = vsel %vm128_vm2, %v224_v20, -inf }
 0x233   :  { %v218_v25 = vpop.f32.mrb[0].mxu0  ;;  %227 = vmax.xlane.f32.xlu1 %v226_v24 }
 0x234   :  { %v225_v26 = vmul.f32 0.35355338, %v218_v25  ;;  %v3081_v27 = vpop.f32.mrb[1].mxu0 }
 0x235   :  { %v221_v28 = vpop.f32.mrb[2].mxu0 }
 0x236   :  { %v3082_v29 = vpop.f32.mrb[3].mxu0  ;;  %v229_v30 = vsel %vm128_vm2, %v225_v26, -inf }
 0x237   :  { %230 = vmax.xlane.f32.xlu1 %v229_v30 }
 0x248   :  { %250 = vrot.lane.b32.xlu1 %v3671_v11, %s3544_s28 }
 0x24c   :  { %299 = vrot.lane.b32.xlu1 %v3675_v14, %s3544_s28 }
 0x250   :  { %349 = vrot.lane.b32.xlu1 %v3671_v11, %s3545_s29 }
 0x2c0   :  { %v228_v31 = vpop.xlane.xlu1 %227 }
 0x2c1   :  { %v232_v32 = vsub.f32 %v224_v20, %v228_v31 }
 0x2c3   :  { %v234_v33 = vmul.f32 1.442695, %v232_v32 }
 0x2c4   :  { %v231_v34 = vpop.xlane.xlu1 %230 }
 0x2c5   :  { %3429 = vpow2.f32 %v234_v33  ;;  %v233_v35 = vsub.f32 %v225_v26, %v231_v34 }
 0x2c7   :  { %v236_v36 = vmul.f32 1.442695, %v233_v35 }
 0x2c8   :  { %v251_v37 = vpop.permute.xlu1 %250 }
 0x2c9   :  { %3431 = vpow2.f32 %v236_v36  ;;  %v257_v38 = vsel %vm255_vm3, %v251_v37, 0 }
 0x2ca   :  { %3084 = vmatpush3.bf16.msra.mxu1 %v257_v38 }
 0x2cb   :  { %3095 = vmatprep.subr.bf16.mxu1 %v3541_v1 }
 0x2cc   :  { %v300_v39 = vpop.permute.xlu1 %299 }
 0x2cd   :  { %v305_v40 = vsel %vm255_vm3, %v300_v39, 0 }
 0x2ce   :  { %3090 = vmatpush3.bf16.msra.mxu0 %v305_v40 }
 0x2cf   :  { %v3430_v41 = vpop.eup %3429  ;;  %3101 = vmatprep.subr.bf16.mxu0 %v3541_v1 }
 0x2d0   :  { %v238_v42 = vsel %vm128_vm2, %v3430_v41, 0.0  ;;  %v350_v45 = vpop.permute.xlu1 %349 }
 0x2d1   :  { %239 = vadd.xlane.f32.xlu0 %v238_v42  ;;  %v355_v52 = vsel %vm128_vm2, %v350_v45, 0 }
 0x2d3   :  { %v3432_v43 = vpop.eup %3431 }
 0x2d4   :  { %v241_v44 = vsel %vm128_vm2, %v3432_v43, 0.0 }
 0x2d5   :  { %242 = vadd.xlane.f32.xlu1 %v241_v44 }
 0x2e6   :  { %399 = vrot.lane.b32.xlu1 %v3675_v14, %s3545_s29 }
 0x2e7   :  { %347 = vrot.lane.b32.xlu0 %v3671_v11, %s3546_s30 }
 0x2ea   :  { %397 = vrot.lane.b32.xlu1 %v3675_v14, %s3546_s30 }
 0x35e   :  { %v240_v46 = vpop.xlane.xlu0 %239 }
 0x35f   :  { %3433 = vrcp.f32 %v240_v46 }
 0x362   :  { %v243_v47 = vpop.xlane.xlu1 %242  ;;  %v348_v57 = vpop.permute.xlu0 %347 }
 0x363   :  { %3435 = vrcp.f32 %v243_v47 }
 0x366   :  { %v400_v54 = vpop.permute.xlu1 %399 }
 0x367   :  { %v405_v56 = vsel %vm128_vm2, %v400_v54, 0 }
 0x369   :  { %v3434_v48 = vpop.eup %3433 }
 0x36a   :  { %v246_v49 = vmul.f32 %v3434_v48, %v3430_v41  ;;  %v398_v58 = vpop.permute.xlu1 %397 }
 0x36c   :  { %v248_v50 = vpack.c.bf16 %v246_v49, %v246_v49 }
 0x36d   :  { %v3436_v51 = vpop.eup %3435 }
 0x36e   :  { %v247_v53 = vmul.f32 %v3436_v51, %v3432_v43  ;;  %3086 = vmatmul.mubr.msk.bf16.vlgmr.msra.gmra.mrb[8].mxu1 %vm128_vm2, %v248_v50 }
 0x36f   :  { %3096 = vmatpush3.bf16.xpose.msra.mxu1 %v355_v52  ;;  %3097 = vmatprep.mubr.msk.bf16.mxu1 %vm3542_vm0, %v3541_v1 }
 0x370   :  { %v249_v55 = vpack.c.bf16 %v247_v53, %v247_v53  ;;  %3107 = vmatprep.subr.bf16.mxu1 %v3541_v1 }
 0x372   :  { %3092 = vmatmul.mubr.msk.bf16.vlgmr.msra.gmra.mrb[4].mxu0 %vm128_vm2, %v249_v55 }
 0x373   :  { %3102 = vmatpush3.bf16.xpose.msra.mxu0 %v405_v56  ;;  %3103 = vmatprep.mubr.msk.bf16.mxu0 %vm3542_vm0, %v3541_v1 }
 0x374   :  { %3113 = vmatprep.subr.bf16.mxu0 %v3541_v1 }
 0x376   :  { %3098 = vmatmul.mubr.msk.bf16.vlgmr.msra.gmra.mrb[12].mxu1 %vm128_vm2, %v348_v57 }
 0x377   :  { %3109 = vmatprep.mubr.msk.bf16.mxu1 %vm3542_vm0, %v3541_v1 }
 0x37a   :  { %3104 = vmatmul.mubr.msk.bf16.vlgmr.msra.gmra.mrb[8].mxu0 %vm128_vm2, %v398_v58 }
 0x37b   :  { %3115 = vmatprep.mubr.msk.bf16.mxu0 %vm3542_vm0, %v3541_v1 }
 0x441   :  { %v3727_v59 = vpop.f32.mrb[8].mxu1 }
 0x442   :  { %v3087_v60 = vpop.f32.mrb[9].mxu1 }
 0x443   :  { %v296_v61 = vpop.f32.mrb[10].mxu1 }
 0x444   :  { %v3088_v62 = vpop.f32.mrb[11].mxu1 }
 0x445   :  { %v3729_v63 = vpop.f32.mrb[4].mxu0 }
 0x446   :  { %v3093_v0 = vpop.f32.mrb[5].mxu0 }
 0x447   :  { %v344_v2 = vpop.f32.mrb[6].mxu0 }
 0x448   :  { %v3094_v5 = vpop.f32.mrb[7].mxu0 }
 0x449   :  { %v391_v6 = vpop.f32.mrb[12].mxu1 }
 0x44a   :  { %v447_v7 = vmul.f32 0.35355338, %v391_v6  ;;  %v3099_v8 = vpop.f32.mrb[13].mxu1 }
 0x44b   :  { %v394_v9 = vpop.f32.mrb[14].mxu1 }
 0x44c   :  { %v3100_v10 = vpop.f32.mrb[15].mxu1  ;;  %v449_v12 = vsel %vm128_vm2, %v447_v7, -inf }
 0x44d   :  { %v441_v13 = vpop.f32.mrb[8].mxu0  ;;  %450 = vmax.xlane.f32.xlu1 %v449_v12 }
 0x44e   :  { %v448_v15 = vmul.f32 0.35355338, %v441_v13  ;;  %v3105_v16 = vpop.f32.mrb[9].mxu0 }
 0x44f   :  { %v444_v17 = vpop.f32.mrb[10].mxu0 }
 0x450   :  { %v3106_v18 = vpop.f32.mrb[11].mxu0  ;;  %v452_v19 = vsel %vm128_vm2, %v448_v15, -inf }
 0x451   :  { %453 = vmax.xlane.f32.xlu0 %v452_v19 }
 0x45e   :  { %473 = vrot.lane.b32.xlu1 %v3671_v11, %s3547_s16 }
 0x462   :  { %571 = vrot.lane.b32.xlu1 %v3671_v11, %s3548_s17 }
 0x467   :  { %521 = vrot.lane.b32.xlu0 %v3675_v14, %s3547_s16 }
 0x46b   :  { %569 = vrot.lane.b32.xlu0 %v3671_v11, %s3549_s18 }
 0x4da   :  { %v451_v20 = vpop.xlane.xlu1 %450 }
 0x4db   :  { %v455_v21 = vsub.f32 %v447_v7, %v451_v20 }
 0x4dd   :  { %v457_v22 = vmul.f32 1.442695, %v455_v21 }
 0x4de   :  { %v454_v23 = vpop.xlane.xlu0 %453  ;;  %v474_v24 = vpop.permute.xlu1 %473 }
 0x4df   :  { %3437 = vpow2.f32 %v457_v22  ;;  %v456_v25 = vsub.f32 %v448_v15, %v454_v23  ;;  %v479_v26 = vsel %vm255_vm3, %v474_v24, 0 }
 0x4e0   :  { %3108 = vmatpush3.bf16.msra.mxu1 %v479_v26 }
 0x4e1   :  { %v459_v27 = vmul.f32 1.442695, %v456_v25  ;;  %3119 = vmatprep.subr.bf16.mxu1 %v3541_v1 }
 0x4e2   :  { %v522_v28 = vpop.permute.xlu0 %521  ;;  %v572_v34 = vpop.permute.xlu1 %571 }
 0x4e3   :  { %3439 = vpow2.f32 %v459_v27  ;;  %v527_v29 = vsel %vm255_vm3, %v522_v28, 0  ;;  %v577_v41 = vsel %vm128_vm2, %v572_v34, 0 }
 0x4e4   :  { %3114 = vmatpush3.bf16.msra.mxu0 %v527_v29 }
 0x4e5   :  { %3125 = vmatprep.subr.bf16.mxu0 %v3541_v1 }
 0x4e6   :  { %v570_v46 = vpop.permute.xlu0 %569 }
 0x4e9   :  { %v3438_v30 = vpop.eup %3437 }
 0x4ea   :  { %v461_v31 = vsel %vm128_vm2, %v3438_v30, 0.0 }
 0x4eb   :  { %462 = vadd.xlane.f32.xlu1 %v461_v31 }
 0x4ed   :  { %v3440_v32 = vpop.eup %3439 }
 0x4ee   :  { %v464_v33 = vsel %vm128_vm2, %v3440_v32, 0.0 }
 0x4ef   :  { %465 = vadd.xlane.f32.xlu1 %v464_v33 }
 0x500   :  { %621 = vrot.lane.b32.xlu1 %v3675_v14, %s3548_s17 }
 0x504   :  { %619 = vrot.lane.b32.xlu1 %v3675_v14, %s3549_s18 }
 0x578   :  { %v463_v35 = vpop.xlane.xlu1 %462 }
 0x579   :  { %3441 = vrcp.f32 %v463_v35 }
 0x57c   :  { %v466_v36 = vpop.xlane.xlu1 %465 }
 0x57d   :  { %3443 = vrcp.f32 %v466_v36 }
 0x580   :  { %v622_v43 = vpop.permute.xlu1 %621 }
 0x581   :  { %v627_v45 = vsel %vm128_vm2, %v622_v43, 0 }
 0x583   :  { %v3442_v37 = vpop.eup %3441 }
 0x584   :  { %v469_v38 = vmul.f32 %v3442_v37, %v3438_v30  ;;  %v620_v47 = vpop.permute.xlu1 %619 }
 0x586   :  { %v471_v39 = vpack.c.bf16 %v469_v38, %v469_v38 }
 0x587   :  { %v3444_v40 = vpop.eup %3443 }
 0x588   :  { %v470_v42 = vmul.f32 %v3444_v40, %v3440_v32  ;;  %3110 = vmatmul.mubr.msk.bf16.vlgmr.msra.gmra.mrb[16].mxu1 %vm128_vm2, %v471_v39 }
 0x589   :  { %3120 = vmatpush3.bf16.xpose.msra.mxu1 %v577_v41  ;;  %3121 = vmatprep.mubr.msk.bf16.mxu1 %vm3542_vm0, %v3541_v1 }
 0x58a   :  { %v472_v44 = vpack.c.bf16 %v470_v42, %v470_v42  ;;  %3131 = vmatprep.subr.bf16.mxu1 %v3541_v1 }
 0x58c   :  { %3116 = vmatmul.mubr.msk.bf16.vlgmr.msra.gmra.mrb[12].mxu0 %vm128_vm2, %v472_v44 }
 0x58d   :  { %3126 = vmatpush3.bf16.xpose.msra.mxu0 %v627_v45  ;;  %3127 = vmatprep.mubr.msk.bf16.mxu0 %vm3542_vm0, %v3541_v1 }
 0x58e   :  { %3137 = vmatprep.subr.bf16.mxu0 %v3541_v1 }
 0x590   :  { %3122 = vmatmul.mubr.msk.bf16.vlgmr.msra.gmra.mrb[20].mxu1 %vm128_vm2, %v570_v46 }
 0x591   :  { %3133 = vmatprep.mubr.msk.bf16.mxu1 %vm3542_vm0, %v3541_v1 }
 0x594   :  { %3128 = vmatmul.mubr.msk.bf16.vlgmr.msra.gmra.mrb[16].mxu0 %vm128_vm2, %v620_v47 }
 0x595   :  { %3139 = vmatprep.mubr.msk.bf16.mxu0 %vm3542_vm0, %v3541_v1 }
 0x65b   :  { %v3767_v48 = vpop.f32.mrb[16].mxu1 }
 0x65c   :  { %v3111_v49 = vpop.f32.mrb[17].mxu1 }
 0x65d   :  { %v518_v50 = vpop.f32.mrb[18].mxu1 }
 0x65e   :  { %v3112_v51 = vpop.f32.mrb[19].mxu1 }
 0x65f   :  { %v3769_v52 = vpop.f32.mrb[12].mxu0 }
 0x660   :  { %v3369_v53 = vpack.i.bf16 %v3769_v52, %v3767_v48  ;;  %v3117_v54 = vpop.f32.mrb[13].mxu0 }
 0x661   :  { %v566_v55 = vpop.f32.mrb[14].mxu0 }
 0x662   :  { %v3118_v56 = vpop.f32.mrb[15].mxu0 }
 0x663   :  { %v613_v57 = vpop.f32.mrb[20].mxu1 }
 0x664   :  { %v669_v58 = vmul.f32 0.35355338, %v613_v57  ;;  %v3123_v60 = vpop.f32.mrb[21].mxu1 }
 0x665   :  { %v616_v61 = vpop.f32.mrb[22].mxu1 }
 0x666   :  { %v3124_v62 = vpop.f32.mrb[23].mxu1  ;;  %v671_v0 = vsel %vm128_vm2, %v669_v58, -inf }
 0x667   :  { %v663_v2 = vpop.f32.mrb[16].mxu0  ;;  %672 = vmax.xlane.f32.xlu0 %v671_v0 }
 0x668   :  { %v670_v5 = vmul.f32 0.35355338, %v663_v2  ;;  %v3129_v6 = vpop.f32.mrb[17].mxu0 }
 0x669   :  { %v666_v7 = vpop.f32.mrb[18].mxu0 }
 0x66a   :  { %v3130_v8 = vpop.f32.mrb[19].mxu0  ;;  %v674_v9 = vsel %vm128_vm2, %v670_v5, -inf }
 0x66b   :  { %675 = vmax.xlane.f32.xlu1 %v674_v9 }
 0x67c   :  { %695 = vrot.lane.b32.xlu1 %v3671_v11, %s3550_s19 }
 0x680   :  { %793 = vrot.lane.b32.xlu1 %v3671_v11, %s4256_s20 }
 0x684   :  { %843 = vrot.lane.b32.xlu1 %v3675_v14, %s4256_s20  ;;  %s4263_s20 = smov 24  }
 0x688   :  { %841 = vrot.lane.b32.xlu1 %v3675_v14, %s4254_s21 }
 0x6f4   :  { %v673_v10 = vpop.xlane.xlu0 %672 }
 0x6f5   :  { %v677_v12 = vsub.f32 %v669_v58, %v673_v10 }
 0x6f7   :  { %v679_v13 = vmul.f32 1.442695, %v677_v12 }
 0x6f8   :  { %v676_v15 = vpop.xlane.xlu1 %675 }
 0x6f9   :  { %3445 = vpow2.f32 %v679_v13  ;;  %v678_v16 = vsub.f32 %v670_v5, %v676_v15 }
 0x6fb   :  { %v681_v17 = vmul.f32 1.442695, %v678_v16 }
 0x6fc   :  { %v696_v18 = vpop.permute.xlu1 %695 }
 0x6fd   :  { %3447 = vpow2.f32 %v681_v17  ;;  %v701_v19 = vsel %vm255_vm3, %v696_v18, 0 }
 0x6fe   :  { %3132 = vmatpush3.bf16.msra.mxu1 %v701_v19 }
 0x6ff   :  { %3143 = vmatprep.subr.bf16.mxu1 %v3541_v1 }
 0x700   :  { %v794_v29 = vpop.permute.xlu1 %793 }
 0x701   :  { %v799_v33 = vsel %vm128_vm2, %v794_v29, 0 }
 0x703   :  { %v3446_v20 = vpop.eup %3445 }
 0x704   :  { %v683_v21 = vsel %vm128_vm2, %v3446_v20, 0.0  ;;  %v844_v35 = vpop.permute.xlu1 %843 }
 0x705   :  { %684 = vadd.xlane.f32.xlu0 %v683_v21  ;;  %v849_v37 = vsel %vm128_vm2, %v844_v35, 0 }
 0x707   :  { %v3448_v22 = vpop.eup %3447 }
 0x708   :  { %v686_v23 = vsel %vm128_vm2, %v3448_v22, 0.0  ;;  %v842_v39 = vpop.permute.xlu1 %841 }
 0x709   :  { %687 = vadd.xlane.f32.xlu0 %v686_v23 }
 0x71f   :  { %743 = vrot.lane.b32.xlu0 %v3675_v14, %s3550_s19 }
 0x723   :  { %791 = vrot.lane.b32.xlu0 %v3671_v11, %s4254_s21 }
 0x792   :  { %v685_v24 = vpop.xlane.xlu0 %684 }
 0x793   :  { %3449 = vrcp.f32 %v685_v24  ;;  %v3401_v24 = vld [vmem:[%s4235_s3] sm:$0xff]  }
 0x796   :  { %v688_v25 = vpop.xlane.xlu0 %687 }
 0x797   :  { %3451 = vrcp.f32 %v688_v25  ;;  %v3402_v25 = vld [vmem:[%s4235_s3 + $0x8] sm:$0xff]  }
 0x79a   :  { %v744_v26 = vpop.permute.xlu0 %743 }
 0x79b   :  { %v749_v27 = vsel %vm255_vm3, %v744_v26, 0 }
 0x79c   :  { %3138 = vmatpush3.bf16.msra.mxu0 %v749_v27 }
 0x79d   :  { %v3450_v28 = vpop.eup %3449  ;;  %3149 = vmatprep.subr.bf16.mxu0 %v3541_v1 }
 0x79e   :  { %v691_v30 = vmul.f32 %v3450_v28, %v3446_v20  ;;  %v792_v38 = vpop.permute.xlu0 %791 }
 0x7a0   :  { %v693_v31 = vpack.c.bf16 %v691_v30, %v691_v30 }
 0x7a1   :  { %v3452_v32 = vpop.eup %3451 }
 0x7a2   :  { %v692_v34 = vmul.f32 %v3452_v32, %v3448_v22  ;;  %3134 = vmatmul.mubr.msk.bf16.vlgmr.msra.gmra.mrb[24].mxu1 %vm128_vm2, %v693_v31 }
 0x7a3   :  { %3144 = vmatpush3.bf16.xpose.msra.mxu1 %v799_v33  ;;  %3145 = vmatprep.mubr.msk.bf16.mxu1 %vm3542_vm0, %v3541_v1 }
 0x7a4   :  { %v694_v36 = vpack.c.bf16 %v692_v34, %v692_v34  ;;  %3155 = vmatprep.subr.bf16.mxu1 %v3541_v1 }
 0x7a6   :  { %3140 = vmatmul.mubr.msk.bf16.vlgmr.msra.gmra.mrb[20].mxu0 %vm128_vm2, %v694_v36 }
 0x7a7   :  { %3150 = vmatpush3.bf16.xpose.msra.mxu0 %v849_v37  ;;  %3151 = vmatprep.mubr.msk.bf16.mxu0 %vm3542_vm0, %v3541_v1 }
 0x7a8   :  { %3161 = vmatprep.subr.bf16.mxu0 %v3541_v1 }
 0x7aa   :  { %3146 = vmatmul.mubr.msk.bf16.vlgmr.msra.gmra.mrb[28].mxu1 %vm128_vm2, %v792_v38 }
 0x7ab   :  { %3157 = vmatprep.mubr.msk.bf16.mxu1 %vm3542_vm0, %v3541_v1 }
 0x7ae   :  { %3152 = vmatmul.mubr.msk.bf16.vlgmr.msra.gmra.mrb[24].mxu0 %vm128_vm2, %v842_v39 }
 0x7af   :  { %3163 = vmatprep.mubr.msk.bf16.mxu0 %vm3542_vm0, %v3541_v1 }
 0x875   :  { %v737_v40 = vpop.f32.mrb[24].mxu1 }
 0x876   :  { %v3135_v41 = vpop.f32.mrb[25].mxu1 }
 0x877   :  { %v740_v42 = vpop.f32.mrb[26].mxu1 }
 0x878   :  { %v3136_v43 = vpop.f32.mrb[27].mxu1 }
 0x879   :  { %v785_v44 = vpop.f32.mrb[20].mxu0 }
 0x87a   :  { %v3374_v45 = vpack.i.bf16 %v785_v44, %v737_v40  ;;  %v3141_v46 = vpop.f32.mrb[21].mxu0 }
 0x87b   :  { %v788_v47 = vpop.f32.mrb[22].mxu0 }
 0x87c   :  { %v3142_v49 = vpop.f32.mrb[23].mxu0 }
 0x87d   :  { %v835_v50 = vpop.f32.mrb[28].mxu1 }
 0x87e   :  { %v891_v51 = vmul.f32 0.35355338, %v835_v50  ;;  %v3147_v54 = vpop.f32.mrb[29].mxu1 }
 0x87f   :  { %v838_v55 = vpop.f32.mrb[30].mxu1 }
 0x880   :  { %v3148_v56 = vpop.f32.mrb[31].mxu1  ;;  %v893_v57 = vsel %vm128_vm2, %v891_v51, -inf }
 0x881   :  { %v885_v58 = vpop.f32.mrb[24].mxu0  ;;  %894 = vmax.xlane.f32.xlu0 %v893_v57 }
 0x882   :  { %v892_v60 = vmul.f32 0.35355338, %v885_v58  ;;  %v3153_v61 = vpop.f32.mrb[25].mxu0 }
 0x883   :  { %v888_v62 = vpop.f32.mrb[26].mxu0 }
 0x884   :  { %v3154_v0 = vpop.f32.mrb[27].mxu0  ;;  %v896_v2 = vsel %vm128_vm2, %v892_v60, -inf }
 0x885   :  { %897 = vmax.xlane.f32.xlu1 %v896_v2 }
 0x896   :  { %917 = vrot.lane.b32.xlu1 %v3671_v11, %s4252_s22 }
 0x89a   :  { %3370 = vrot.lane.b32.xlu1 %v3369_v53, %s4248_s23 }
 0x89e   :  { %3375 = vrot.lane.b32.xlu1 %v3374_v45, %s4251_s24 }
 0x90e   :  { %v895_v5 = vpop.xlane.xlu0 %894 }
 0x90f   :  { %v899_v6 = vsub.f32 %v891_v51, %v895_v5 }
 0x911   :  { %v901_v7 = vmul.f32 1.442695, %v899_v6 }
 0x912   :  { %v898_v8 = vpop.xlane.xlu1 %897 }
 0x913   :  { %3453 = vpow2.f32 %v901_v7  ;;  %v900_v9 = vsub.f32 %v892_v60, %v898_v8 }
 0x915   :  { %v903_v10 = vmul.f32 1.442695, %v900_v9 }
 0x916   :  { %v918_v12 = vpop.permute.xlu1 %917 }
 0x917   :  { %3455 = vpow2.f32 %v903_v10  ;;  %v923_v11 = vsel %vm255_vm3, %v918_v12, 0 }
 0x918   :  { %3156 = vmatpush3.bf16.msra.mxu1 %v923_v11 }
 0x919   :  { %3167 = vmatprep.subr.bf16.mxu1 %v3541_v1 }
 0x91a   :  { %v3371_v35 = vpop.permute.xlu1 %3370 }
 0x91b   :  { %v3373_v37 = vunpack.i.h.bf16 %v3371_v35  ;;  %v3372_v38 = vunpack.i.l.bf16 %v3371_v35  ;;  %v3412_v35 = vld [vmem:[%s4241_s9 + $0x38] sm:$0xff]  }
 0x91d   :  { %v3454_v13 = vpop.eup %3453  ;;  %v1038_v42 = vsel %vm128_vm2, %v3729_v63, %v3373_v37  ;;  %v1037_v43 = vsel %vm128_vm2, %v3727_v59, %v3372_v38  ;;  %v2858_v59 = vld [vmem:[%s4236_s4] ss:$0 sm:$0xff] }
 0x91e   :  { %v905_v48 = vsel %vm128_vm2, %v3454_v13, 0.0  ;;  %v3376_v36 = vpop.permute.xlu1 %3375 }
 0x91f   :  { %906 = vadd.xlane.f32.xlu0 %v905_v48  ;;  %v3378_v39 = vunpack.i.h.bf16 %v3376_v36  ;;  %v3377_v40 = vunpack.i.l.bf16 %v3376_v36  ;;  %v3405_v48 = vld [vmem:[%s4241_s9] sm:$0xff]  }
 0x920   :  { %v2864_v36 = vld [vmem:[%s4240_s8] ss:$0 sm:$0xff] }
 0x921   :  { %v3456_v52 = vpop.eup %3455  ;;  %v1041_v46 = vsel %vm1039_vm4, %v1038_v42, %v3378_v39  ;;  %v1040_v47 = vsel %vm1039_vm4, %v1037_v43, %v3377_v40 }
 0x922   :  { %v908_v53 = vsel %vm128_vm2, %v3456_v52, 0.0 }
 0x923   :  { %909 = vadd.xlane.f32.xlu0 %v908_v53  ;;  %v3407_v53 = vld [vmem:[%s4241_s9 + $0x10] sm:$0xff]  }
 0x939   :  { %965 = vrot.lane.b32.xlu0 %v3675_v14, %s4252_s22 }
 0x9ac   :  { %v907_v15 = vpop.xlane.xlu0 %906 }
 0x9ad   :  { %3457 = vrcp.f32 %v907_v15  ;;  %v3408_v15 = vld [vmem:[%s4241_s9 + $0x18] sm:$0xff]  }
 0x9b0   :  { %v910_v16 = vpop.xlane.xlu0 %909 }
 0x9b1   :  { %3459 = vrcp.f32 %v910_v16  ;;  %v3409_v16 = vld [vmem:[%s4241_s9 + $0x20] sm:$0xff]  }
 0x9b4   :  { %v966_v17 = vpop.permute.xlu0 %965 }
 0x9b5   :  { %v971_v18 = vsel %vm255_vm3, %v966_v17, 0  ;;  %v3410_v17 = vld [vmem:[%s4241_s9 + $0x28] sm:$0xff]  }
 0x9b6   :  { %3162 = vmatpush3.bf16.msra.mxu0 %v971_v18 }
 0x9b7   :  { %v3458_v19 = vpop.eup %3457  ;;  %3175 = vmatprep.subr.bf16.mxu0 %v3541_v1 }
 0x9b8   :  { %v913_v20 = vmul.f32 %v3458_v19, %v3454_v13  ;;  %v3404_v13 = vld [vmem:[%s4239_s7 + $0x8] sm:$0xff]  }
 0x9ba   :  { %v915_v21 = vpack.c.bf16 %v913_v20, %v913_v20 }
 0x9bb   :  { %v3460_v22 = vpop.eup %3459 }
 0x9bc   :  { %v914_v23 = vmul.f32 %v3460_v22, %v3456_v52  ;;  %3158 = vmatmul.mubr.msk.bf16.vlgmr.msra.gmra.mrb[32].mxu1 %vm128_vm2, %v915_v21  ;;  %v3406_v52 = vld [vmem:[%s4241_s9 + $0x8] sm:$0xff]  }
 0x9bd   :  { %3171 = vmatprep.mubr.msk.bf16.mxu1 %vm3542_vm0, %v3541_v1  ;;  %3168 = vmatpush3.bf16.msra.mxu1 %v3401_v24  ;;  %v2862_v24 = vld [vmem:[%s4237_s5] ss:$0 sm:$0xff] }
 0x9be   :  { %v916_v14 = vpack.c.bf16 %v914_v23, %v914_v23  ;;  %3169 = vmatprep.subr.bf16.mxu1 %v3541_v1 }
 0x9c0   :  { %3164 = vmatmul.mubr.msk.bf16.vlgmr.msra.gmra.mrb[28].mxu0 %vm128_vm2, %v916_v14 }
 0x9c1   :  { %3179 = vmatprep.mubr.msk.bf16.mxu0 %vm3542_vm0, %v3541_v1  ;;  %3170 = vmatpush3.bf16.msra.mxu1 %v3402_v25 }
 0x9c2   :  { %3183 = vmatprep.subr.bf16.mxu1 %v3541_v1 }
 0xa8f   :  { %v959_v26 = vpop.f32.mrb[32].mxu1 }
 0xa90   :  { %v3159_v27 = vpop.f32.mrb[33].mxu1 }
 0xa91   :  { %v962_v28 = vpop.f32.mrb[34].mxu1 }
 0xa92   :  { %v3160_v29 = vpop.f32.mrb[35].mxu1 }
 0xa93   :  { %v1007_v30 = vpop.f32.mrb[28].mxu0  ;;  %v2863_v29 = vld [vmem:[%s4238_s6] ss:$0 sm:$0xff] }
 0xa94   :  { %v3379_v31 = vpack.i.bf16 %v1007_v30, %v959_v26  ;;  %v3165_v32 = vpop.f32.mrb[29].mxu0 }
 0xa95   :  { %v1010_v33 = vpop.f32.mrb[30].mxu0 }
 0xa96   :  { %v3166_v34 = vpop.f32.mrb[31].mxu0  ;;  %3380 = vrot.lane.b32.xlu0 %v3379_v31, %s4250_s25 }
 0xa97   :  { %v3411_v34 = vld [vmem:[%s4241_s9 + $0x30] sm:$0xff]  }
 0xb08   :  { %v3381_v41 = vpop.permute.xlu0 %3380 }
 0xb09   :  { %v3383_v44 = vunpack.i.h.bf16 %v3381_v41  ;;  %v3382_v45 = vunpack.i.l.bf16 %v3381_v41 }
 0xb0b   :  { %v1044_v49 = vsel %vm1042_vm5, %v1041_v46, %v3383_v44  ;;  %v1043_v50 = vsel %vm1042_vm5, %v1040_v47, %v3382_v45  ;;  %v2868_v46 = vld [vmem:[%s4242_s10] ss:$0 sm:$0xff] }
 0xb0c   :  { %v1045_v51 = vpack.c.bf16 %v1044_v49, %v1043_v50 }
 0xb0e   :  { %3172 = vmatmul.mubr.msk.bf16.vlgmr.msra.gmra.mrb[36].mxu1 %vm78_vm1, %v1045_v51 }
 0xb0f   :  { %3199 = vmatprep.mubr.msk.bf16.mxu1 %vm3542_vm0, %v3541_v1  ;;  %3184 = vmatpush3.bf16.msra.mxu1 %v3405_v48 }
 0xb10   :  { %3185 = vmatprep.subr.bf16.mxu1 %v3541_v1 }
 0xb13   :  { %3186 = vmatpush3.bf16.msra.mxu1 %v3406_v52 }
 0xb14   :  { %3187 = vmatprep.subr.bf16.mxu1 %v3541_v1 }
 0xb17   :  { %3188 = vmatpush3.bf16.msra.mxu1 %v3407_v53  ;;  %v2877_v53 = vld [vmem:[%s4243_s11] ss:$0 sm:$0xff] }
 0xb18   :  { %3189 = vmatprep.subr.bf16.mxu1 %v3541_v1 }
 0xb1b   :  { %3190 = vmatpush3.bf16.msra.mxu1 %v3408_v15 }
 0xb1c   :  { %3191 = vmatprep.subr.bf16.mxu1 %v3541_v1 }
 0xb1f   :  { %3192 = vmatpush3.bf16.msra.mxu1 %v3409_v16 }
 0xb20   :  { %3193 = vmatprep.subr.bf16.mxu1 %v3541_v1 }
 0xb23   :  { %3194 = vmatpush3.bf16.msra.mxu1 %v3410_v17 }
 0xb24   :  { %3195 = vmatprep.subr.bf16.mxu1 %v3541_v1 }
 0xb27   :  { %3196 = vmatpush3.bf16.msra.mxu1 %v3411_v34 }
 0xb28   :  { %3197 = vmatprep.subr.bf16.mxu1 %v3541_v1 }
 0xb2b   :  { %3198 = vmatpush3.bf16.msra.mxu1 %v3412_v35 }
 0xb2c   :  { %3229 = vmatprep.subr.bf16.mxu1 %v3541_v1 }
 0xbe1   :  { %v1106_v63 = vpop.f32.mrb[36].mxu1 }
 0xbe2   :  { %v1107_v54 = vadd.f32 %v2858_v59, %v1106_v63  ;;  %v3173_v55 = vpop.f32.mrb[37].mxu1 }
 0xbe3   :  { %v1109_v56 = vpop.f32.mrb[38].mxu1 }
 0xbe4   :  { %v1110_v57 = vadd.f32 %v2858_v59, %v1109_v56  ;;  %v3174_v58 = vpop.f32.mrb[39].mxu1  ;;  %v1113_v60 = vadd.f32 %v1107_v54, %v3652_v3 }
 0xbe6   :  { %v1117_v61 = vsel %vm78_vm1, %v1113_v60, 0.0  ;;  %v1114_v62 = vadd.f32 %v1110_v57, %v3657_v4  ;;  %v3403_v4 = vld [vmem:[%s4239_s7] sm:$0xff]  }
 0xbe7   :  { %1118 = vadd.xlane.f32.xlu1 %v1117_v61  ;;  %3176 = vmatpush3.bf16.msra.mxu0 %v3403_v4 }
 0xbe8   :  { %v1120_v0 = vsel %vm78_vm1, %v1114_v62, 0.0  ;;  %3177 = vmatprep.subr.bf16.mxu0 %v3541_v1 }
 0xbe9   :  { %1121 = vadd.xlane.f32.xlu0 %v1120_v0 }
 0xbeb   :  { %3178 = vmatpush3.bf16.msra.mxu0 %v3404_v13 }
 0xbec   :  { %3203 = vmatprep.subr.bf16.mxu0 %v3541_v1 }
 0xc74   :  { %v1119_v2 = vpop.xlane.xlu1 %1118 }
 0xc75   :  { %v1124_v5 = vmul.f32 0.03125, %v1119_v2 }
 0xc76   :  { %v1122_v6 = vpop.xlane.xlu0 %1121 }
 0xc77   :  { %v1126_v7 = vsub.f32 %v1113_v60, %v1124_v5  ;;  %v1125_v8 = vmul.f32 0.03125, %v1122_v6 }
 0xc79   :  { %v1127_v9 = vsub.f32 %v1114_v62, %v1125_v8  ;;  %v1128_v10 = vmul.f32 %v1126_v7, %v1126_v7 }
 0xc7b   :  { %v1130_v12 = vsel %vm78_vm1, %v1128_v10, 0.0  ;;  %v1129_v11 = vmul.f32 %v1127_v9, %v1127_v9  ;;  %v3414_v10 = vld [vmem:[%s4233_s1 + $0x18] sm:$0xff]  }
 0xc7c   :  { %1131 = vadd.xlane.f32.xlu0 %v1130_v12 }
 0xc7d   :  { %v1133_v3 = vsel %vm78_vm1, %v1129_v11, 0.0 }
 0xc7e   :  { %1134 = vadd.xlane.f32.xlu1 %v1133_v3 }
 0xd09   :  { %v1132_v18 = vpop.xlane.xlu0 %1131 }
 0xd0a   :  { %v1136_v19 = vmul.f32 0.03125, %v1132_v18 }
 0xd0b   :  { %v1135_v20 = vpop.xlane.xlu1 %1134 }
 0xd0c   :  { %v1138_v21 = vadd.f32 1e-05, %v1136_v19  ;;  %v1137_v22 = vmul.f32 0.03125, %v1135_v20  ;;  %v2878_v19 = vld [vmem:[%s4244_s12] ss:$0 sm:$0xff] }
 0xd0e   :  { %3461 = vrsqrt.f32 %v1138_v21  ;;  %v1139_v23 = vadd.f32 1e-05, %v1137_v22 }
 0xd10   :  { %3463 = vrsqrt.f32 %v1139_v23 }
 0xd18   :  { %v3462_v14 = vpop.eup %3461 }
 0xd19   :  { %v1142_v25 = vmul.f32 %v3462_v14, %v1126_v7  ;;  %v2884_v14 = vld [vmem:[%s4234_s2 + $0x1] ss:$0 sm:$0xff]  ;;  %s4258_s2 = smov 72  }
 0xd1a   :  { %v3464_v26 = vpop.eup %3463 }
 0xd1b   :  { %v1150_v27 = vmul.f32 %v2862_v24, %v1142_v25  ;;  %v1143_v28 = vmul.f32 %v3464_v26, %v1127_v9  ;;  %v3413_v9 = vld [vmem:[%s4233_s1 + $0x10] sm:$0xff]  }
 0xd1d   :  { %v1151_v30 = vmul.f32 %v2862_v24, %v1143_v28  ;;  %v1158_v31 = vadd.f32 %v2863_v29, %v1150_v27 }
 0xd1f   :  { %v1159_v32 = vadd.f32 %v2863_v29, %v1151_v30 }
 0xd21   :  { %v1160_v33 = vpack.c.bf16 %v1159_v32, %v1158_v31 }
 0xd23   :  { %3180 = vmatmul.mubr.msk.bf16.vlgmr.msra.gmra.mrb[32].mxu0 %vm78_vm1, %v1160_v33 }
 0xd24   :  { %3207 = vmatprep.mubr.msk.bf16.mxu0 %vm3542_vm0, %v3541_v1  ;;  %3204 = vmatpush3.bf16.msra.mxu0 %v3413_v9 }
 0xd25   :  { %3205 = vmatprep.subr.bf16.mxu0 %v3541_v1 }
 0xd28   :  { %3206 = vmatpush3.bf16.msra.mxu0 %v3414_v10 }
 0xd29   :  { %3211 = vmatprep.subr.bf16.mxu0 %v3541_v1 }
 0xdf6   :  { %v1221_v37 = vpop.f32.mrb[32].mxu0 }
 0xdf7   :  { %v1222_v38 = vadd.f32 %v2864_v36, %v1221_v37  ;;  %v3181_v39 = vpop.f32.mrb[33].mxu0 }
 0xdf8   :  { %v1224_v40 = vpop.f32.mrb[34].mxu0 }
 0xdf9   :  { %v1225_v41 = vadd.f32 %v2864_v36, %v1224_v40  ;;  %v3182_v42 = vpop.f32.mrb[35].mxu0  ;;  %v1228_v43 = vmax.f32 %v1222_v38, 0.0 }
 0xdfb   :  { %v1229_v44 = vmax.f32 %v1225_v41, 0.0 }
 0xdfd   :  { %v1230_v45 = vpack.c.bf16 %v1229_v44, %v1228_v43 }
 0xdff   :  { %3200 = vmatmul.mubr.bf16.vlgmr.msra.gmra.mrb[40].mxu1 %v1230_v45 }
 0xe00   :  { %3231 = vmatprep.mubr.msk.bf16.mxu1 %vm3542_vm0, %v3541_v1 }
 0xed2   :  { %v1336_v47 = vpop.f32.mrb[40].mxu1 }
 0xed3   :  { %v1337_v49 = vadd.f32 %v2868_v46, %v1336_v47  ;;  %v3201_v50 = vpop.f32.mrb[41].mxu1 }
 0xed4   :  { %v1339_v51 = vpop.f32.mrb[42].mxu1 }
 0xed5   :  { %v1340_v59 = vadd.f32 %v2868_v46, %v1339_v51  ;;  %v3202_v63 = vpop.f32.mrb[43].mxu1  ;;  %v1343_v54 = vadd.f32 %v1337_v49, %v1158_v31 }
 0xed7   :  { %v1347_v55 = vsel %vm78_vm1, %v1343_v54, 0.0  ;;  %v1344_v56 = vadd.f32 %v1340_v59, %v1159_v32 }
 0xed8   :  { %1348 = vadd.xlane.f32.xlu0 %v1347_v55 }
 0xed9   :  { %v1350_v57 = vsel %vm78_vm1, %v1344_v56, 0.0 }
 0xeda   :  { %1351 = vadd.xlane.f32.xlu1 %v1350_v57 }
 0xf65   :  { %v1349_v58 = vpop.xlane.xlu0 %1348 }
 0xf66   :  { %v1353_v60 = vmul.f32 0.03125, %v1349_v58 }
 0xf67   :  { %v1352_v61 = vpop.xlane.xlu1 %1351 }
 0xf68   :  { %v1355_v62 = vsub.f32 %v1343_v54, %v1353_v60  ;;  %v1354_v0 = vmul.f32 0.03125, %v1352_v61 }
 0xf6a   :  { %v1356_v2 = vsub.f32 %v1344_v56, %v1354_v0  ;;  %v1357_v5 = vmul.f32 %v1355_v62, %v1355_v62 }
 0xf6c   :  { %v1359_v6 = vsel %vm78_vm1, %v1357_v5, 0.0  ;;  %v1358_v7 = vmul.f32 %v1356_v2, %v1356_v2 }
 0xf6d   :  { %1360 = vadd.xlane.f32.xlu0 %v1359_v6 }
 0xf6e   :  { %v1362_v8 = vsel %vm78_vm1, %v1358_v7, 0.0 }
 0xf6f   :  { %1363 = vadd.xlane.f32.xlu1 %v1362_v8 }
 0xffa   :  { %v1361_v12 = vpop.xlane.xlu0 %1360 }
 0xffb   :  { %v1365_v11 = vmul.f32 0.03125, %v1361_v12 }
 0xffc   :  { %v1364_v3 = vpop.xlane.xlu1 %1363 }
 0xffd   :  { %v1367_v4 = vadd.f32 1e-05, %v1365_v11  ;;  %v1366_v13 = vmul.f32 0.03125, %v1364_v3 }
 0xfff   :  { %3465 = vrsqrt.f32 %v1367_v4  ;;  %v1368_v48 = vadd.f32 1e-05, %v1366_v13 }
0x1001   :  { %3467 = vrsqrt.f32 %v1368_v48 }
0x1009   :  { %v3466_v52 = vpop.eup %3465 }
0x100a   :  { %v1371_v15 = vmul.f32 %v3466_v52, %v1355_v62 }
0x100b   :  { %v3468_v16 = vpop.eup %3467 }
0x100c   :  { %v1379_v17 = vmul.f32 %v2877_v53, %v1371_v15  ;;  %v1372_v18 = vmul.f32 %v3468_v16, %v1356_v2 }
0x100e   :  { %v1380_v20 = vmul.f32 %v2877_v53, %v1372_v18  ;;  %v3936_v21 = vadd.f32 %v2878_v19, %v1379_v17 }
0x1010   :  { %v3938_v22 = vadd.f32 %v2878_v19, %v1380_v20 }
0x1012   :  { %v1389_v23 = vpack.c.bf16 %v3938_v22, %v3936_v21 }
0x1014   :  { %3208 = vmatmul.mubr.msk.bf16.vlgmr.msra.gmra.mrb[36].mxu0 %vm78_vm1, %v1389_v23 }
0x1015   :  { %3213 = vmatprep.mubr.msk.bf16.mxu0 %vm3542_vm0, %v3541_v1 }
0x10e7   :  { %v1452_v24 = vpop.f32.mrb[36].mxu0 }
0x10e8   :  { %v1453_v25 = vadd.f32 %v2884_v14, %v1452_v24  ;;  %v3209_v26 = vpop.f32.mrb[37].mxu0 }
0x10e9   :  { %v1455_v27 = vpop.f32.mrb[38].mxu0 }
0x10ea   :  { %v3948_v28 = vpack.c.bf16 %v1453_v25, %v1453_v25  ;;  %v1456_v29 = vadd.f32 %v2884_v14, %v1455_v27  ;;  %v3210_v30 = vpop.f32.mrb[39].mxu0 }
0x10ec   :  { %v3950_v31 = vpack.c.bf16 %v1456_v29, %v1456_v29  ;;  %1462 = vrot.lane.b32.xlu0 %v3948_v28, %s3543_s27 }
0x10ee   :  { %1511 = vrot.lane.b32.xlu1 %v3950_v31, %s3543_s27  ;;  %s4259_s27 = smov 104  }
0x115e   :  { %v1463_v32 = vpop.permute.xlu0 %1462 }
0x115f   :  { %v1468_v33 = vsel %vm128_vm2, %v1463_v32, 0 }
0x1160   :  { %3212 = vmatpush3.bf16.xpose.msra.mxu0 %v1468_v33  ;;  %v1512_v34 = vpop.permute.xlu1 %1511 }
0x1161   :  { %3217 = vmatprep.subr.bf16.mxu0 %v3541_v1  ;;  %v1517_v35 = vsel %vm128_vm2, %v1512_v34, 0 }
0x1167   :  { %3214 = vmatmul.mubr.msk.bf16.vlgmr.msra.gmra.mrb[40].mxu0 %vm128_vm2, %v3948_v28 }
0x1168   :  { %3218 = vmatpush3.bf16.xpose.msra.mxu0 %v1517_v35  ;;  %3219 = vmatprep.mubr.msk.bf16.mxu0 %vm3542_vm0, %v3541_v1 }
0x1169   :  { %3223 = vmatprep.subr.bf16.mxu0 %v3541_v1 }
0x116f   :  { %3220 = vmatmul.mubr.msk.bf16.vlgmr.msra.gmra.mrb[44].mxu0 %vm128_vm2, %v3950_v31 }
0x1170   :  { %3225 = vmatprep.mubr.msk.bf16.mxu0 %vm3542_vm0, %v3541_v1 }
0x123a   :  { %v1504_v36 = vpop.f32.mrb[40].mxu0 }
0x123b   :  { %v1559_v37 = vmul.f32 0.35355338, %v1504_v36  ;;  %v3215_v38 = vpop.f32.mrb[41].mxu0 }
0x123c   :  { %v1507_v39 = vpop.f32.mrb[42].mxu0 }
0x123d   :  { %v3216_v40 = vpop.f32.mrb[43].mxu0  ;;  %v1561_v41 = vsel %vm128_vm2, %v1559_v37, -inf }
0x123e   :  { %1562 = vmax.xlane.f32.xlu1 %v1561_v41 }
0x1242   :  { %v1553_v42 = vpop.f32.mrb[44].mxu0 }
0x1243   :  { %v1560_v43 = vmul.f32 0.35355338, %v1553_v42  ;;  %v3221_v44 = vpop.f32.mrb[45].mxu0 }
0x1244   :  { %v1556_v45 = vpop.f32.mrb[46].mxu0 }
0x1245   :  { %v3222_v46 = vpop.f32.mrb[47].mxu0  ;;  %v1564_v47 = vsel %vm128_vm2, %v1560_v43, -inf }
0x1246   :  { %1565 = vmax.xlane.f32.xlu0 %v1564_v47 }
0x124f   :  { %1633 = vrot.lane.b32.xlu1 %v3950_v31, %s3544_s28 }
0x125c   :  { %1585 = vrot.lane.b32.xlu0 %v3948_v28, %s3544_s28  ;;  %s4260_s28 = smov 40  }
0x12cb   :  { %v1563_v49 = vpop.xlane.xlu1 %1562 }
0x12cc   :  { %v1567_v50 = vsub.f32 %v1559_v37, %v1563_v49 }
0x12ce   :  { %v1569_v51 = vmul.f32 1.442695, %v1567_v50 }
0x12cf   :  { %v1634_v59 = vpop.permute.xlu1 %1633 }
0x12d0   :  { %3469 = vpow2.f32 %v1569_v51  ;;  %v1639_v63 = vsel %vm255_vm3, %v1634_v59, 0 }
0x12d1   :  { %3230 = vmatpush3.bf16.msra.mxu1 %v1639_v63 }
0x12d2   :  { %3241 = vmatprep.subr.bf16.mxu1 %v3541_v1 }
0x12d3   :  { %v1566_v54 = vpop.xlane.xlu0 %1565 }
0x12d4   :  { %v1568_v55 = vsub.f32 %v1560_v43, %v1566_v54 }
0x12d6   :  { %v1571_v56 = vmul.f32 1.442695, %v1568_v55 }
0x12d7   :  { %v1586_v57 = vpop.permute.xlu0 %1585 }
0x12d8   :  { %3471 = vpow2.f32 %v1571_v56  ;;  %v1591_v58 = vsel %vm255_vm3, %v1586_v57, 0 }
0x12d9   :  { %3224 = vmatpush3.bf16.msra.mxu0 %v1591_v58 }
0x12da   :  { %v3470_v60 = vpop.eup %3469  ;;  %3235 = vmatprep.subr.bf16.mxu0 %v3541_v1 }
0x12db   :  { %v1573_v61 = vsel %vm128_vm2, %v3470_v60, 0.0 }
0x12dc   :  { %1574 = vadd.xlane.f32.xlu0 %v1573_v61 }
0x12e2   :  { %v3472_v62 = vpop.eup %3471 }
0x12e3   :  { %v1576_v0 = vsel %vm128_vm2, %v3472_v62, 0.0 }
0x12e4   :  { %1577 = vadd.xlane.f32.xlu1 %v1576_v0 }
0x12f2   :  { %1733 = vrot.lane.b32.xlu0 %v3950_v31, %s3545_s29 }
0x12f5   :  { %1683 = vrot.lane.b32.xlu1 %v3948_v28, %s3545_s29  ;;  %s4261_s29 = smov 16  }
0x12f6   :  { %1731 = vrot.lane.b32.xlu0 %v3950_v31, %s3546_s30 }
0x12f9   :  { %1681 = vrot.lane.b32.xlu1 %v3948_v28, %s3546_s30  ;;  %s4262_s30 = smov 8  }
0x1369   :  { %v1575_v2 = vpop.xlane.xlu0 %1574 }
0x136a   :  { %3473 = vrcp.f32 %v1575_v2 }
0x136d   :  { %v1734_v3 = vpop.permute.xlu0 %1733 }
0x136e   :  { %v1739_v48 = vsel %vm128_vm2, %v1734_v3, 0 }
0x1371   :  { %v1578_v5 = vpop.xlane.xlu1 %1577  ;;  %v1732_v52 = vpop.permute.xlu0 %1731 }
0x1372   :  { %3475 = vrcp.f32 %v1578_v5 }
0x1374   :  { %v3474_v6 = vpop.eup %3473 }
0x1375   :  { %v1581_v7 = vmul.f32 %v3474_v6, %v3470_v60  ;;  %v1684_v8 = vpop.permute.xlu1 %1683 }
0x1376   :  { %v1689_v10 = vsel %vm128_vm2, %v1684_v8, 0 }
0x1377   :  { %v1583_v9 = vpack.c.bf16 %v1581_v7, %v1581_v7 }
0x1379   :  { %3226 = vmatmul.mubr.msk.bf16.vlgmr.msra.gmra.mrb[48].mxu0 %vm128_vm2, %v1583_v9  ;;  %v1682_v13 = vpop.permute.xlu1 %1681 }
0x137a   :  { %3236 = vmatpush3.bf16.xpose.msra.mxu0 %v1689_v10  ;;  %3237 = vmatprep.mubr.msk.bf16.mxu0 %vm3542_vm0, %v3541_v1 }
0x137b   :  { %3247 = vmatprep.subr.bf16.mxu0 %v3541_v1 }
0x137c   :  { %v3476_v12 = vpop.eup %3475 }
0x137d   :  { %v1582_v11 = vmul.f32 %v3476_v12, %v3472_v62 }
0x137f   :  { %v1584_v4 = vpack.c.bf16 %v1582_v11, %v1582_v11 }
0x1381   :  { %3232 = vmatmul.mubr.msk.bf16.vlgmr.msra.gmra.mrb[44].mxu1 %vm128_vm2, %v1584_v4  ;;  %3238 = vmatmul.mubr.msk.bf16.vlgmr.msra.gmra.mrb[52].mxu0 %vm128_vm2, %v1682_v13 }
0x1382   :  { %3242 = vmatpush3.bf16.xpose.msra.mxu1 %v1739_v48  ;;  %3243 = vmatprep.mubr.msk.bf16.mxu1 %vm3542_vm0, %v3541_v1 }
0x1383   :  { %3253 = vmatprep.subr.bf16.mxu1 %v3541_v1  ;;  %3249 = vmatprep.mubr.msk.bf16.mxu0 %vm3542_vm0, %v3541_v1 }
0x1389   :  { %3244 = vmatmul.mubr.msk.bf16.vlgmr.msra.gmra.mrb[48].mxu1 %vm128_vm2, %v1732_v52 }
0x138a   :  { %3255 = vmatprep.mubr.msk.bf16.mxu1 %vm3542_vm0, %v3541_v1 }
0x144c   :  { %v4004_v53 = vpop.f32.mrb[48].mxu0 }
0x144d   :  { %v3227_v15 = vpop.f32.mrb[49].mxu0 }
0x144e   :  { %v1630_v16 = vpop.f32.mrb[50].mxu0 }
0x144f   :  { %v3228_v17 = vpop.f32.mrb[51].mxu0 }
0x1454   :  { %v4006_v18 = vpop.f32.mrb[44].mxu1  ;;  %v1725_v19 = vpop.f32.mrb[52].mxu0 }
0x1455   :  { %v1781_v20 = vmul.f32 0.35355338, %v1725_v19  ;;  %v3233_v23 = vpop.f32.mrb[45].mxu1  ;;  %v3239_v14 = vpop.f32.mrb[53].mxu0 }
0x1456   :  { %v1678_v24 = vpop.f32.mrb[46].mxu1  ;;  %v1728_v25 = vpop.f32.mrb[54].mxu0 }
0x1457   :  { %v3234_v26 = vpop.f32.mrb[47].mxu1  ;;  %v3240_v27 = vpop.f32.mrb[55].mxu0  ;;  %v1783_v29 = vsel %vm128_vm2, %v1781_v20, -inf }
0x1458   :  { %1784 = vmax.xlane.f32.xlu1 %v1783_v29 }
0x145c   :  { %v1775_v30 = vpop.f32.mrb[48].mxu1 }
0x145d   :  { %v1782_v32 = vmul.f32 0.35355338, %v1775_v30  ;;  %v3245_v33 = vpop.f32.mrb[49].mxu1 }
0x145e   :  { %v1778_v34 = vpop.f32.mrb[50].mxu1 }
0x145f   :  { %v3246_v35 = vpop.f32.mrb[51].mxu1  ;;  %v1786_v36 = vsel %vm128_vm2, %v1782_v32, -inf }
0x1460   :  { %1787 = vmax.xlane.f32.xlu0 %v1786_v36 }
0x1469   :  { %1855 = vrot.lane.b32.xlu1 %v3950_v31, %s3547_s16 }
0x1476   :  { %1807 = vrot.lane.b32.xlu0 %v3948_v28, %s3547_s16 }
0x14e5   :  { %v1785_v37 = vpop.xlane.xlu1 %1784 }
0x14e6   :  { %v1789_v38 = vsub.f32 %v1781_v20, %v1785_v37 }
0x14e8   :  { %v1791_v39 = vmul.f32 1.442695, %v1789_v38 }
0x14e9   :  { %v1856_v40 = vpop.permute.xlu1 %1855 }
0x14ea   :  { %3477 = vpow2.f32 %v1791_v39  ;;  %v1861_v41 = vsel %vm255_vm3, %v1856_v40, 0 }
0x14eb   :  { %3254 = vmatpush3.bf16.msra.mxu1 %v1861_v41 }
0x14ec   :  { %3265 = vmatprep.subr.bf16.mxu1 %v3541_v1 }
0x14ed   :  { %v1788_v42 = vpop.xlane.xlu0 %1787 }
0x14ee   :  { %v1790_v43 = vsub.f32 %v1782_v32, %v1788_v42 }
0x14f0   :  { %v1793_v44 = vmul.f32 1.442695, %v1790_v43 }
0x14f1   :  { %v1808_v45 = vpop.permute.xlu0 %1807 }
0x14f2   :  { %3479 = vpow2.f32 %v1793_v44  ;;  %v1813_v46 = vsel %vm255_vm3, %v1808_v45, 0 }
0x14f3   :  { %3248 = vmatpush3.bf16.msra.mxu0 %v1813_v46 }
0x14f4   :  { %v3478_v47 = vpop.eup %3477  ;;  %3259 = vmatprep.subr.bf16.mxu0 %v3541_v1 }
0x14f5   :  { %v1795_v49 = vsel %vm128_vm2, %v3478_v47, 0.0 }
0x14f6   :  { %1796 = vadd.xlane.f32.xlu0 %v1795_v49 }
0x14fc   :  { %v3480_v50 = vpop.eup %3479 }
0x14fd   :  { %v1798_v51 = vsel %vm128_vm2, %v3480_v50, 0.0 }
0x14fe   :  { %1799 = vadd.xlane.f32.xlu1 %v1798_v51 }
0x150c   :  { %1955 = vrot.lane.b32.xlu0 %v3950_v31, %s3548_s17 }
0x150f   :  { %1905 = vrot.lane.b32.xlu1 %v3948_v28, %s3548_s17 }
0x1510   :  { %1953 = vrot.lane.b32.xlu0 %v3950_v31, %s3549_s18 }
0x1513   :  { %1903 = vrot.lane.b32.xlu1 %v3948_v28, %s3549_s18 }
0x1583   :  { %v1797_v59 = vpop.xlane.xlu0 %1796 }
0x1584   :  { %3481 = vrcp.f32 %v1797_v59 }
0x1587   :  { %v1956_v62 = vpop.permute.xlu0 %1955 }
0x1588   :  { %v1961_v5 = vsel %vm128_vm2, %v1956_v62, 0 }
0x158b   :  { %v1800_v63 = vpop.xlane.xlu1 %1799  ;;  %v1954_v6 = vpop.permute.xlu0 %1953 }
0x158c   :  { %3483 = vrcp.f32 %v1800_v63 }
0x158e   :  { %v3482_v54 = vpop.eup %3481 }
0x158f   :  { %v1803_v55 = vmul.f32 %v3482_v54, %v3478_v47  ;;  %v1906_v56 = vpop.permute.xlu1 %1905 }
0x1590   :  { %v1911_v58 = vsel %vm128_vm2, %v1906_v56, 0 }
0x1591   :  { %v1805_v57 = vpack.c.bf16 %v1803_v55, %v1803_v55 }
0x1593   :  { %3250 = vmatmul.mubr.msk.bf16.vlgmr.msra.gmra.mrb[56].mxu0 %vm128_vm2, %v1805_v57  ;;  %v1904_v2 = vpop.permute.xlu1 %1903 }
0x1594   :  { %3260 = vmatpush3.bf16.xpose.msra.mxu0 %v1911_v58  ;;  %3261 = vmatprep.mubr.msk.bf16.mxu0 %vm3542_vm0, %v3541_v1 }
0x1595   :  { %3271 = vmatprep.subr.bf16.mxu0 %v3541_v1 }
0x1596   :  { %v3484_v60 = vpop.eup %3483 }
0x1597   :  { %v1804_v61 = vmul.f32 %v3484_v60, %v3480_v50 }
0x1599   :  { %v1806_v0 = vpack.c.bf16 %v1804_v61, %v1804_v61 }
0x159b   :  { %3256 = vmatmul.mubr.msk.bf16.vlgmr.msra.gmra.mrb[52].mxu1 %vm128_vm2, %v1806_v0  ;;  %3262 = vmatmul.mubr.msk.bf16.vlgmr.msra.gmra.mrb[60].mxu0 %vm128_vm2, %v1904_v2 }
0x159c   :  { %3266 = vmatpush3.bf16.xpose.msra.mxu1 %v1961_v5  ;;  %3267 = vmatprep.mubr.msk.bf16.mxu1 %vm3542_vm0, %v3541_v1 }
0x159d   :  { %3277 = vmatprep.subr.bf16.mxu1 %v3541_v1  ;;  %3273 = vmatprep.mubr.msk.bf16.mxu0 %vm3542_vm0, %v3541_v1 }
0x15a3   :  { %3268 = vmatmul.mubr.msk.bf16.vlgmr.msra.gmra.mrb[56].mxu1 %vm128_vm2, %v1954_v6 }
0x15a4   :  { %3279 = vmatprep.mubr.msk.bf16.mxu1 %vm3542_vm0, %v3541_v1 }
0x1666   :  { %v4044_v7 = vpop.f32.mrb[56].mxu0 }
0x1667   :  { %v3251_v8 = vpop.f32.mrb[57].mxu0 }
0x1668   :  { %v1852_v9 = vpop.f32.mrb[58].mxu0 }
0x1669   :  { %v3252_v10 = vpop.f32.mrb[59].mxu0 }
0x166e   :  { %v4046_v12 = vpop.f32.mrb[52].mxu1  ;;  %v1947_v11 = vpop.f32.mrb[60].mxu0 }
0x166f   :  { %v3384_v3 = vpack.i.bf16 %v4046_v12, %v4044_v7  ;;  %v2003_v4 = vmul.f32 0.35355338, %v1947_v11  ;;  %v3257_v13 = vpop.f32.mrb[53].mxu1  ;;  %v3263_v48 = vpop.f32.mrb[61].mxu0 }
0x1670   :  { %v1900_v52 = vpop.f32.mrb[54].mxu1  ;;  %v1950_v15 = vpop.f32.mrb[62].mxu0 }
0x1671   :  { %v3258_v16 = vpop.f32.mrb[55].mxu1  ;;  %v3264_v17 = vpop.f32.mrb[63].mxu0  ;;  %v2005_v19 = vsel %vm128_vm2, %v2003_v4, -inf }
0x1672   :  { %2006 = vmax.xlane.f32.xlu1 %v2005_v19 }
0x1676   :  { %v1997_v20 = vpop.f32.mrb[56].mxu1 }
0x1677   :  { %v2004_v23 = vmul.f32 0.35355338, %v1997_v20  ;;  %v3269_v14 = vpop.f32.mrb[57].mxu1 }
0x1678   :  { %v2000_v24 = vpop.f32.mrb[58].mxu1 }
0x1679   :  { %v3270_v25 = vpop.f32.mrb[59].mxu1  ;;  %v2008_v26 = vsel %vm128_vm2, %v2004_v23, -inf }
0x167a   :  { %2009 = vmax.xlane.f32.xlu0 %v2008_v26 }
0x1683   :  { %2077 = vrot.lane.b32.xlu1 %v3950_v31, %s3550_s19 }
0x1690   :  { %2029 = vrot.lane.b32.xlu0 %v3948_v28, %s3550_s19 }
0x16ff   :  { %v2007_v27 = vpop.xlane.xlu1 %2006 }
0x1700   :  { %v2011_v29 = vsub.f32 %v2003_v4, %v2007_v27 }
0x1702   :  { %v2013_v30 = vmul.f32 1.442695, %v2011_v29 }
0x1703   :  { %v2078_v32 = vpop.permute.xlu1 %2077 }
0x1704   :  { %3485 = vpow2.f32 %v2013_v30  ;;  %v2083_v33 = vsel %vm255_vm3, %v2078_v32, 0 }
0x1705   :  { %3278 = vmatpush3.bf16.msra.mxu1 %v2083_v33 }
0x1706   :  { %3289 = vmatprep.subr.bf16.mxu1 %v3541_v1 }
0x1707   :  { %v2010_v34 = vpop.xlane.xlu0 %2009 }
0x1708   :  { %v2012_v35 = vsub.f32 %v2004_v23, %v2010_v34 }
0x170a   :  { %v2015_v36 = vmul.f32 1.442695, %v2012_v35 }
0x170b   :  { %v2030_v37 = vpop.permute.xlu0 %2029 }
0x170c   :  { %3487 = vpow2.f32 %v2015_v36  ;;  %v2035_v38 = vsel %vm255_vm3, %v2030_v37, 0 }
0x170d   :  { %3272 = vmatpush3.bf16.msra.mxu0 %v2035_v38 }
0x170e   :  { %v3486_v39 = vpop.eup %3485  ;;  %3283 = vmatprep.subr.bf16.mxu0 %v3541_v1 }
0x170f   :  { %v2017_v40 = vsel %vm128_vm2, %v3486_v39, 0.0 }
0x1710   :  { %2018 = vadd.xlane.f32.xlu0 %v2017_v40 }
0x1716   :  { %v3488_v41 = vpop.eup %3487 }
0x1717   :  { %v2020_v42 = vsel %vm128_vm2, %v3488_v41, 0.0 }
0x1718   :  { %2021 = vadd.xlane.f32.xlu1 %v2020_v42  ;;  %v3416_v42 = vld [vmem:[%s4235_s3 + $0x18] sm:$0xff]  }
0x1726   :  { %2177 = vrot.lane.b32.xlu0 %v3950_v31, %s4258_s2 }
0x1729   :  { %2127 = vrot.lane.b32.xlu1 %v3948_v28, %s4258_s2 }
0x172a   :  { %2175 = vrot.lane.b32.xlu0 %v3950_v31, %s4259_s27 }
0x172d   :  { %2125 = vrot.lane.b32.xlu1 %v3948_v28, %s4259_s27 }
0x179d   :  { %v2019_v43 = vpop.xlane.xlu0 %2018 }
0x179e   :  { %3489 = vrcp.f32 %v2019_v43 }
0x17a1   :  { %v2178_v63 = vpop.permute.xlu0 %2177 }
0x17a2   :  { %v2183_v56 = vsel %vm128_vm2, %v2178_v63, 0 }
0x17a5   :  { %v2022_v44 = vpop.xlane.xlu1 %2021  ;;  %v2176_v57 = vpop.permute.xlu0 %2175 }
0x17a6   :  { %3491 = vrcp.f32 %v2022_v44 }
0x17a8   :  { %v3490_v45 = vpop.eup %3489 }
0x17a9   :  { %v2025_v46 = vmul.f32 %v3490_v45, %v3486_v39  ;;  %v2128_v47 = vpop.permute.xlu1 %2127 }
0x17aa   :  { %v2133_v50 = vsel %vm128_vm2, %v2128_v47, 0 }
0x17ab   :  { %v2027_v49 = vpack.c.bf16 %v2025_v46, %v2025_v46 }
0x17ad   :  { %3274 = vmatmul.mubr.msk.bf16.vlgmr.msra.gmra.mrb[64].mxu0 %vm128_vm2, %v2027_v49  ;;  %v2126_v55 = vpop.permute.xlu1 %2125 }
0x17ae   :  { %3284 = vmatpush3.bf16.xpose.msra.mxu0 %v2133_v50  ;;  %3285 = vmatprep.mubr.msk.bf16.mxu0 %vm3542_vm0, %v3541_v1 }
0x17af   :  { %3295 = vmatprep.subr.bf16.mxu0 %v3541_v1 }
0x17b0   :  { %v3492_v51 = vpop.eup %3491 }
0x17b1   :  { %v2026_v59 = vmul.f32 %v3492_v51, %v3488_v41  ;;  %v3415_v41 = vld [vmem:[%s4235_s3 + $0x10] sm:$0xff]  }
0x17b3   :  { %v2028_v54 = vpack.c.bf16 %v2026_v59, %v2026_v59 }
0x17b5   :  { %3280 = vmatmul.mubr.msk.bf16.vlgmr.msra.gmra.mrb[60].mxu1 %vm128_vm2, %v2028_v54  ;;  %3286 = vmatmul.mubr.msk.bf16.vlgmr.msra.gmra.mrb[68].mxu0 %vm128_vm2, %v2126_v55 }
0x17b6   :  { %3290 = vmatpush3.bf16.xpose.msra.mxu1 %v2183_v56  ;;  %3291 = vmatprep.mubr.msk.bf16.mxu1 %vm3542_vm0, %v3541_v1 }
0x17b7   :  { %3301 = vmatprep.subr.bf16.mxu1 %v3541_v1  ;;  %3297 = vmatprep.mubr.msk.bf16.mxu0 %vm3542_vm0, %v3541_v1 }
0x17bd   :  { %3292 = vmatmul.mubr.msk.bf16.vlgmr.msra.gmra.mrb[64].mxu1 %vm128_vm2, %v2176_v57 }
0x17be   :  { %3303 = vmatprep.mubr.msk.bf16.mxu1 %vm3542_vm0, %v3541_v1 }
0x1880   :  { %v2071_v58 = vpop.f32.mrb[64].mxu0 }
0x1881   :  { %v3275_v60 = vpop.f32.mrb[65].mxu0 }
0x1882   :  { %v2074_v61 = vpop.f32.mrb[66].mxu0 }
0x1883   :  { %v3276_v62 = vpop.f32.mrb[67].mxu0 }
0x1888   :  { %v2119_v0 = vpop.f32.mrb[60].mxu1  ;;  %v2169_v2 = vpop.f32.mrb[68].mxu0 }
0x1889   :  { %v3389_v5 = vpack.i.bf16 %v2119_v0, %v2071_v58  ;;  %v2225_v6 = vmul.f32 0.35355338, %v2169_v2  ;;  %v3281_v8 = vpop.f32.mrb[61].mxu1  ;;  %v3287_v9 = vpop.f32.mrb[69].mxu0 }
0x188a   :  { %v2122_v10 = vpop.f32.mrb[62].mxu1  ;;  %v2172_v11 = vpop.f32.mrb[70].mxu0 }
0x188b   :  { %v3282_v4 = vpop.f32.mrb[63].mxu1  ;;  %v3288_v13 = vpop.f32.mrb[71].mxu0  ;;  %v2227_v48 = vsel %vm128_vm2, %v2225_v6, -inf }
0x188c   :  { %2228 = vmax.xlane.f32.xlu1 %v2227_v48 }
0x1890   :  { %v2219_v52 = vpop.f32.mrb[64].mxu1 }
0x1891   :  { %v2226_v15 = vmul.f32 0.35355338, %v2219_v52  ;;  %v3293_v16 = vpop.f32.mrb[65].mxu1 }
0x1892   :  { %v2222_v17 = vpop.f32.mrb[66].mxu1 }
0x1893   :  { %v3294_v19 = vpop.f32.mrb[67].mxu1  ;;  %v2230_v20 = vsel %vm128_vm2, %v2226_v15, -inf }
0x1894   :  { %2231 = vmax.xlane.f32.xlu0 %v2230_v20 }
0x1919   :  { %v2229_v23 = vpop.xlane.xlu1 %2228 }
0x191a   :  { %v2233_v14 = vsub.f32 %v2225_v6, %v2229_v23 }
0x191c   :  { %v2235_v24 = vmul.f32 1.442695, %v2233_v14 }
0x191e   :  { %3493 = vpow2.f32 %v2235_v24 }
0x1921   :  { %v2232_v25 = vpop.xlane.xlu0 %2231 }
0x1922   :  { %v2234_v26 = vsub.f32 %v2226_v15, %v2232_v25 }
0x1924   :  { %v2237_v27 = vmul.f32 1.442695, %v2234_v26 }
0x1926   :  { %3495 = vpow2.f32 %v2237_v27 }
0x1928   :  { %v3494_v29 = vpop.eup %3493 }
0x1929   :  { %v2239_v30 = vsel %vm128_vm2, %v3494_v29, 0.0 }
0x192a   :  { %2240 = vadd.xlane.f32.xlu0 %v2239_v30 }
0x1930   :  { %v3496_v32 = vpop.eup %3495 }
0x1931   :  { %v2242_v33 = vsel %vm128_vm2, %v3496_v32, 0.0 }
0x1932   :  { %2243 = vadd.xlane.f32.xlu1 %v2242_v33  ;;  %v3419_v33 = vld [vmem:[%s4241_s9 + $0x40] sm:$0xff]  }
0x1940   :  { %2251 = vrot.lane.b32.xlu0 %v3948_v28, %s4260_s28 }
0x1943   :  { %2299 = vrot.lane.b32.xlu1 %v3950_v31, %s4260_s28 }
0x1944   :  { %3390 = vrot.lane.b32.xlu0 %v3389_v5, %s4261_s29 }
0x1947   :  { %3385 = vrot.lane.b32.xlu1 %v3384_v3, %s4262_s30 }
0x19b7   :  { %v2241_v34 = vpop.xlane.xlu0 %2240 }
0x19b8   :  { %3497 = vrcp.f32 %v2241_v34  ;;  %v3420_v34 = vld [vmem:[%s4241_s9 + $0x48] sm:$0xff]  }
0x19bb   :  { %v2252_v35 = vpop.permute.xlu0 %2251 }
0x19bc   :  { %v2257_v36 = vsel %vm255_vm3, %v2252_v35, 0  ;;  %v3421_v35 = vld [vmem:[%s4241_s9 + $0x50] sm:$0xff]  }
0x19bd   :  { %3296 = vmatpush3.bf16.msra.mxu0 %v2257_v36  ;;  %v3422_v36 = vld [vmem:[%s4241_s9 + $0x58] sm:$0xff]  }
0x19be   :  { %3307 = vmatprep.subr.bf16.mxu0 %v3541_v1 }
0x19bf   :  { %v2244_v37 = vpop.xlane.xlu1 %2243  ;;  %v3391_v56 = vpop.permute.xlu0 %3390 }
0x19c0   :  { %3499 = vrcp.f32 %v2244_v37  ;;  %v3393_v60 = vunpack.i.h.bf16 %v3391_v56  ;;  %v3392_v61 = vunpack.i.l.bf16 %v3391_v56  ;;  %v3423_v37 = vld [vmem:[%s4241_s9 + $0x60] sm:$0xff]  }
0x19c2   :  { %v3498_v28 = vpop.eup %3497 }
0x19c3   :  { %v2247_v38 = vmul.f32 %v3498_v28, %v3494_v29  ;;  %v2300_v31 = vpop.permute.xlu1 %2299  ;;  %v3424_v28 = vld [vmem:[%s4241_s9 + $0x68] sm:$0xff]  }
0x19c4   :  { %v2305_v39 = vsel %vm255_vm3, %v2300_v31, 0 }
0x19c5   :  { %3302 = vmatpush3.bf16.msra.mxu1 %v2305_v39  ;;  %v2249_v40 = vpack.c.bf16 %v2247_v38, %v2247_v38 }
0x19c6   :  { %3315 = vmatprep.subr.bf16.mxu1 %v3541_v1 }
0x19c7   :  { %3298 = vmatmul.mubr.msk.bf16.vlgmr.msra.gmra.mrb[72].mxu0 %vm128_vm2, %v2249_v40  ;;  %v3386_v63 = vpop.permute.xlu1 %3385 }
0x19c8   :  { %3311 = vmatprep.mubr.msk.bf16.mxu0 %vm3542_vm0, %v3541_v1  ;;  %3308 = vmatpush3.bf16.msra.mxu0 %v3415_v41  ;;  %v3388_v54 = vunpack.i.h.bf16 %v3386_v63  ;;  %v3387_v55 = vunpack.i.l.bf16 %v3386_v63  ;;  %v3426_v63 = vld [vmem:[%s4241_s9 + $0x78] sm:$0xff]  }
0x19c9   :  { %3309 = vmatprep.subr.bf16.mxu0 %v3541_v1 }
0x19ca   :  { %v3500_v7 = vpop.eup %3499  ;;  %v2372_v57 = vsel %vm128_vm2, %v4006_v18, %v3388_v54  ;;  %v2371_v58 = vsel %vm128_vm2, %v4004_v53, %v3387_v55  ;;  %v2909_v53 = vld [vmem:[%s4236_s4 + $0x1] ss:$0 sm:$0xff] }
0x19cb   :  { %v2248_v12 = vmul.f32 %v3500_v7, %v3496_v32  ;;  %v2373_v5 = vsel %vm1039_vm4, %v2371_v58, %v3392_v61  ;;  %v2374_v6 = vsel %vm1039_vm4, %v2372_v57, %v3393_v60  ;;  %v3418_v32 = vld [vmem:[%s4239_s7 + $0x18] sm:$0xff]   ;;  %v2922_v54 = vld [vmem:[%s4240_s8 + $0x1] ss:$0 sm:$0xff] }
0x19cc   :  { %3310 = vmatpush3.bf16.msra.mxu0 %v3416_v42  ;;  %v2915_v42 = vld [vmem:[%s4237_s5 + $0x1] ss:$0 sm:$0xff] }
0x19cd   :  { %v2250_v3 = vpack.c.bf16 %v2248_v12, %v2248_v12  ;;  %3323 = vmatprep.subr.bf16.mxu0 %v3541_v1 }
0x19cf   :  { %3304 = vmatmul.mubr.msk.bf16.vlgmr.msra.gmra.mrb[68].mxu1 %vm128_vm2, %v2250_v3 }
0x19d0   :  { %3319 = vmatprep.mubr.msk.bf16.mxu1 %vm3542_vm0, %v3541_v1 }
0x1a9a   :  { %v2293_v43 = vpop.f32.mrb[72].mxu0 }
0x1a9b   :  { %v3299_v44 = vpop.f32.mrb[73].mxu0 }
0x1a9c   :  { %v2296_v45 = vpop.f32.mrb[74].mxu0 }
0x1a9d   :  { %v3300_v46 = vpop.f32.mrb[75].mxu0 }
0x1a9e   :  { %v2916_v46 = vld [vmem:[%s4238_s6 + $0x1] ss:$0 sm:$0xff] }
0x1aa2   :  { %v2341_v47 = vpop.f32.mrb[68].mxu1 }
0x1aa3   :  { %v3394_v49 = vpack.i.bf16 %v2341_v47, %v2293_v43  ;;  %v3305_v50 = vpop.f32.mrb[69].mxu1 }
0x1aa4   :  { %v2344_v51 = vpop.f32.mrb[70].mxu1 }
0x1aa5   :  { %3395 = vrot.lane.b32.xlu1 %v3394_v49, %s4263_s20  ;;  %v3306_v59 = vpop.f32.mrb[71].mxu1 }
0x1aa6   :  { %v3425_v59 = vld [vmem:[%s4241_s9 + $0x70] sm:$0xff]  }
0x1b17   :  { %v3396_v62 = vpop.permute.xlu1 %3395 }
0x1b18   :  { %v3398_v0 = vunpack.i.h.bf16 %v3396_v62  ;;  %v3397_v2 = vunpack.i.l.bf16 %v3396_v62 }
0x1b1a   :  { %v2376_v8 = vsel %vm1042_vm5, %v2374_v6, %v3398_v0  ;;  %v2375_v9 = vsel %vm1042_vm5, %v2373_v5, %v3397_v2  ;;  %v2943_v5 = vld [vmem:[%s4242_s10 + $0x1] ss:$0 sm:$0xff] }
0x1b1b   :  { %v2377_v10 = vpack.c.bf16 %v2376_v8, %v2375_v9 }
0x1b1d   :  { %3312 = vmatmul.mubr.msk.bf16.vlgmr.msra.gmra.mrb[76].mxu0 %vm78_vm1, %v2377_v10 }
0x1b1e   :  { %3339 = vmatprep.mubr.msk.bf16.mxu0 %vm3542_vm0, %v3541_v1  ;;  %3324 = vmatpush3.bf16.msra.mxu0 %v3419_v33 }
0x1b1f   :  { %3325 = vmatprep.subr.bf16.mxu0 %v3541_v1 }
0x1b22   :  { %3326 = vmatpush3.bf16.msra.mxu0 %v3420_v34 }
0x1b23   :  { %3327 = vmatprep.subr.bf16.mxu0 %v3541_v1 }
0x1b26   :  { %3328 = vmatpush3.bf16.msra.mxu0 %v3421_v35  ;;  %v2954_v35 = vld [vmem:[%s4243_s11 + $0x1] ss:$0 sm:$0xff]  ;;  %s3557_s11 = smov [#allocation2]  }
0x1b27   :  { %3329 = vmatprep.subr.bf16.mxu0 %v3541_v1 }
0x1b2a   :  { %3330 = vmatpush3.bf16.msra.mxu0 %v3422_v36 }
0x1b2b   :  { %3331 = vmatprep.subr.bf16.mxu0 %v3541_v1 }
0x1b2e   :  { %3332 = vmatpush3.bf16.msra.mxu0 %v3423_v37 }
0x1b2f   :  { %3333 = vmatprep.subr.bf16.mxu0 %v3541_v1 }
0x1b32   :  { %3334 = vmatpush3.bf16.msra.mxu0 %v3424_v28 }
0x1b33   :  { %3335 = vmatprep.subr.bf16.mxu0 %v3541_v1 }
0x1b36   :  { %3336 = vmatpush3.bf16.msra.mxu0 %v3425_v59 }
0x1b37   :  { %3337 = vmatprep.subr.bf16.mxu0 %v3541_v1 }
0x1b3a   :  { %3338 = vmatpush3.bf16.msra.mxu0 %v3426_v63 }
0x1bf0   :  { %v2440_v18 = vpop.f32.mrb[76].mxu0 }
0x1bf1   :  { %v2441_v11 = vadd.f32 %v2909_v53, %v2440_v18  ;;  %v3313_v4 = vpop.f32.mrb[77].mxu0 }
0x1bf2   :  { %v2443_v13 = vpop.f32.mrb[78].mxu0 }
0x1bf3   :  { %v2444_v48 = vadd.f32 %v2909_v53, %v2443_v13  ;;  %v3314_v52 = vpop.f32.mrb[79].mxu0  ;;  %v2447_v15 = vadd.f32 %v2441_v11, %v3936_v21 }
0x1bf5   :  { %v2448_v16 = vadd.f32 %v2444_v48, %v3938_v22  ;;  %v2453_v17 = vsel %vm78_vm1, %v2447_v15, 0.0  ;;  %v3417_v22 = vld [vmem:[%s4239_s7 + $0x10] sm:$0xff]  }
0x1bf6   :  { %2454 = vadd.xlane.f32.xlu0 %v2453_v17  ;;  %3316 = vmatpush3.bf16.msra.mxu1 %v3417_v22 }
0x1bf7   :  { %v2456_v19 = vsel %vm78_vm1, %v2448_v16, 0.0  ;;  %3317 = vmatprep.subr.bf16.mxu1 %v3541_v1 }
0x1bf8   :  { %2457 = vadd.xlane.f32.xlu1 %v2456_v19 }
0x1bfa   :  { %3318 = vmatpush3.bf16.msra.mxu1 %v3418_v32 }
0x1bfb   :  { %3343 = vmatprep.subr.bf16.mxu1 %v3541_v1 }
0x1c83   :  { %v2455_v20 = vpop.xlane.xlu0 %2454 }
0x1c84   :  { %v2459_v23 = vmul.f32 0.03125, %v2455_v20 }
0x1c85   :  { %v2458_v14 = vpop.xlane.xlu1 %2457 }
0x1c86   :  { %v2461_v24 = vsub.f32 %v2447_v15, %v2459_v23  ;;  %v2460_v25 = vmul.f32 0.03125, %v2458_v14 }
0x1c88   :  { %v2462_v26 = vsub.f32 %v2448_v16, %v2460_v25  ;;  %v2463_v27 = vmul.f32 %v2461_v24, %v2461_v24 }
0x1c8a   :  { %v2465_v29 = vsel %vm78_vm1, %v2463_v27, 0.0  ;;  %v2464_v30 = vmul.f32 %v2462_v26, %v2462_v26  ;;  %v3428_v27 = vld [vmem:[%s4245_s13 + $0x8] sm:$0xff]  }
0x1c8b   :  { %2466 = vadd.xlane.f32.xlu0 %v2465_v29 }
0x1c8c   :  { %v2468_v21 = vsel %vm78_vm1, %v2464_v30, 0.0 }
0x1c8f   :  { %2469 = vadd.xlane.f32.xlu0 %v2468_v21 }
0x1d18   :  { %v2467_v38 = vpop.xlane.xlu0 %2466 }
0x1d19   :  { %v2471_v31 = vmul.f32 0.03125, %v2467_v38 }
0x1d1b   :  { %v2473_v39 = vadd.f32 1e-05, %v2471_v31 }
0x1d1c   :  { %v2470_v40 = vpop.xlane.xlu0 %2469 }
0x1d1d   :  { %3501 = vrsqrt.f32 %v2473_v39  ;;  %v2472_v7 = vmul.f32 0.03125, %v2470_v40 }
0x1d1f   :  { %v2474_v12 = vadd.f32 1e-05, %v2472_v7 }
0x1d21   :  { %3503 = vrsqrt.f32 %v2474_v12  ;;  %v2956_v12 = vld [vmem:[%s4246_s14] ss:$0 sm:$0xff] }
0x1d27   :  { %v3502_v3 = vpop.eup %3501 }
0x1d28   :  { %v2477_v41 = vmul.f32 %v3502_v3, %v2461_v24 }
0x1d2a   :  { %v2485_v44 = vmul.f32 %v2915_v42, %v2477_v41 }
0x1d2b   :  { %v3504_v43 = vpop.eup %3503 }
0x1d2c   :  { %v2478_v45 = vmul.f32 %v3504_v43, %v2462_v26  ;;  %v2493_v49 = vadd.f32 %v2916_v46, %v2485_v44  ;;  %v3427_v26 = vld [vmem:[%s4245_s13] sm:$0xff]  }
0x1d2e   :  { %v2486_v47 = vmul.f32 %v2915_v42, %v2478_v45 }
0x1d30   :  { %v2494_v50 = vadd.f32 %v2916_v46, %v2486_v47 }
0x1d32   :  { %v2495_v51 = vpack.c.bf16 %v2494_v50, %v2493_v49 }
0x1d34   :  { %3320 = vmatmul.mubr.msk.bf16.vlgmr.msra.gmra.mrb[72].mxu1 %vm78_vm1, %v2495_v51 }
0x1d35   :  { %3347 = vmatprep.mubr.msk.bf16.mxu1 %vm3542_vm0, %v3541_v1  ;;  %3344 = vmatpush3.bf16.msra.mxu1 %v3427_v26 }
0x1d36   :  { %3345 = vmatprep.subr.bf16.mxu1 %v3541_v1  ;;  %v2955_v1 = vld [vmem:[%s4244_s12 + $0x1] ss:$0 sm:$0xff]  ;;  %s2827_s12 = sshll.u32 %s3557_s11, 4  ;;  %s2828_s12 = int_to_ptr.vmem [resolvable:$true] %s2827_s12 }
0x1d37   :  { %s3517_s14 = scalar_lea.vmem %s2828_s12, 256  ;;  %p3522_p1 = scmp.lt.s32.totalorder %s2828_s12, %s2828_s12 }
0x1d38   :  { %p3518_p0 = scmp.ne.s32.totalorder %s2828_s12, %s3517_s14  ;;  %p3523_p2 = scmp.lt.s32.totalorder %s3517_s14, %s3517_s14 }
0x1d39   :  { %3346 = vmatpush3.bf16.msra.mxu1 %v3428_v27 }
0x1d3a   :  { %p3524_p3 = por %p3523_p2, %p3522_p1 }
0x1d3c   :  { %p3525_p4 = pnand %p3524_p3, %p3518_p0 }
0x1e07   :  { %v2558_v55 = vpop.f32.mrb[72].mxu1 }
0x1e08   :  { %v2559_v56 = vadd.f32 %v2922_v54, %v2558_v55  ;;  %v3321_v57 = vpop.f32.mrb[73].mxu1 }
0x1e09   :  { %v2561_v58 = vpop.f32.mrb[74].mxu1 }
0x1e0a   :  { %v2562_v60 = vadd.f32 %v2922_v54, %v2561_v58  ;;  %v3322_v61 = vpop.f32.mrb[75].mxu1  ;;  %v2565_v62 = vmax.f32 %v2559_v56, 0.0 }
0x1e0c   :  { %v2566_v0 = vmax.f32 %v2562_v60, 0.0 }
0x1e0e   :  { %v2567_v2 = vpack.c.bf16 %v2566_v0, %v2565_v62 }
0x1e10   :  { %3340 = vmatmul.mubr.bf16.vlgmr.msra.gmra.mrb[80].mxu0 %v2567_v2 }
0x1ee3   :  { %v2675_v6 = vpop.f32.mrb[80].mxu0 }
0x1ee4   :  { %v2676_v8 = vadd.f32 %v2943_v5, %v2675_v6  ;;  %v3341_v9 = vpop.f32.mrb[81].mxu0 }
0x1ee5   :  { %v2678_v10 = vpop.f32.mrb[82].mxu0 }
0x1ee6   :  { %v2682_v53 = vadd.f32 %v2676_v8, %v2493_v49  ;;  %v2679_v18 = vadd.f32 %v2943_v5, %v2678_v10  ;;  %v3342_v11 = vpop.f32.mrb[83].mxu0 }
0x1ee8   :  { %v2688_v4 = vsel %vm78_vm1, %v2682_v53, 0.0  ;;  %v2683_v13 = vadd.f32 %v2679_v18, %v2494_v50 }
0x1ee9   :  { %2689 = vadd.xlane.f32.xlu1 %v2688_v4 }
0x1eea   :  { %v2691_v48 = vsel %vm78_vm1, %v2683_v13, 0.0 }
0x1eeb   :  { %2692 = vadd.xlane.f32.xlu0 %v2691_v48 }
0x1f76   :  { %v2690_v52 = vpop.xlane.xlu1 %2689 }
0x1f77   :  { %v2694_v15 = vmul.f32 0.03125, %v2690_v52 }
0x1f78   :  { %v2693_v16 = vpop.xlane.xlu0 %2692 }
0x1f79   :  { %v2696_v17 = vsub.f32 %v2682_v53, %v2694_v15  ;;  %v2695_v19 = vmul.f32 0.03125, %v2693_v16 }
0x1f7b   :  { %v2697_v20 = vsub.f32 %v2683_v13, %v2695_v19  ;;  %v2698_v23 = vmul.f32 %v2696_v17, %v2696_v17 }
0x1f7d   :  { %v2700_v14 = vsel %vm78_vm1, %v2698_v23, 0.0  ;;  %v2699_v24 = vmul.f32 %v2697_v20, %v2697_v20 }
0x1f7e   :  { %2701 = vadd.xlane.f32.xlu1 %v2700_v14 }
0x1f7f   :  { %v2703_v25 = vsel %vm78_vm1, %v2699_v24, 0.0 }
0x1f80   :  { %2704 = vadd.xlane.f32.xlu0 %v2703_v25 }
0x200b   :  { %v2702_v29 = vpop.xlane.xlu1 %2701 }
0x200c   :  { %v2706_v30 = vmul.f32 0.03125, %v2702_v29 }
0x200d   :  { %v2705_v21 = vpop.xlane.xlu0 %2704 }
0x200e   :  { %v2708_v22 = vadd.f32 1e-05, %v2706_v30  ;;  %v2707_v32 = vmul.f32 0.03125, %v2705_v21 }
0x2010   :  { %3505 = vrsqrt.f32 %v2708_v22  ;;  %v2709_v33 = vadd.f32 1e-05, %v2707_v32 }
0x2012   :  { %3507 = vrsqrt.f32 %v2709_v33 }
0x201a   :  { %v3506_v34 = vpop.eup %3505 }
0x201b   :  { %v2712_v36 = vmul.f32 %v3506_v34, %v2696_v17 }
0x201c   :  { %v3508_v37 = vpop.eup %3507 }
0x201d   :  { %v2720_v28 = vmul.f32 %v2954_v35, %v2712_v36  ;;  %v2713_v38 = vmul.f32 %v3508_v37, %v2697_v20 }
0x201f   :  { %v2721_v31 = vmul.f32 %v2954_v35, %v2713_v38  ;;  %v2728_v39 = vadd.f32 %v2955_v1, %v2720_v28 }
0x2021   :  { %v2729_v40 = vadd.f32 %v2955_v1, %v2721_v31 }
0x2023   :  { %v2730_v7 = vpack.c.bf16 %v2729_v40, %v2728_v39 }
0x2025   :  { %3348 = vmatmul.mubr.msk.bf16.vlgmr.msra.gmra.mrb[76].mxu1 %vm78_vm1, %v2730_v7 }
0x20f8   :  { %v2791_v3 = vpop.f32.mrb[76].mxu1 }
0x20f9   :  { %v2792_v41 = vadd.f32 %v2956_v12, %v2791_v3  ;;  %v3349_v42 = vpop.f32.mrb[77].mxu1 }
0x20fa   :  { %v2794_v43 = vpop.f32.mrb[78].mxu1 }
0x20fb   :  { %v2795_v44 = vadd.f32 %v2956_v12, %v2794_v43  ;;  %v3350_v45 = vpop.f32.mrb[79].mxu1  ;;  %v2798_v46 = vsel %vm1039_vm4, %v2792_v41, -inf }
0x20fc   :  { %2799 = vmax.xlane.f32.xlu1 %v2798_v46 }
0x20fd   :  { %v2801_v47 = vsel %vm1039_vm4, %v2795_v44, -inf }
0x20fe   :  { %2802 = vmax.xlane.f32.xlu0 %v2801_v47 }
0x2189   :  { %v2800_v49 = vpop.xlane.xlu1 %2799 }
0x218a   :  { %v2804_v50 = vsub.f32 %v2792_v41, %v2800_v49 }
0x218b   :  { %v2803_v51 = vpop.xlane.xlu0 %2802 }
0x218c   :  { %v2806_v59 = vmul.f32 1.442695, %v2804_v50  ;;  %v2805_v63 = vsub.f32 %v2795_v44, %v2803_v51 }
0x218e   :  { %3509 = vpow2.f32 %v2806_v59  ;;  %v2808_v54 = vmul.f32 1.442695, %v2805_v63 }
0x2190   :  { %3511 = vpow2.f32 %v2808_v54 }
0x2198   :  { %v3510_v55 = vpop.eup %3509 }
0x2199   :  { %v2810_v56 = vsel %vm1039_vm4, %v3510_v55, 0.0 }
0x219a   :  { %v3512_v57 = vpop.eup %3511  ;;  %2811 = vadd.xlane.f32.xlu1 %v2810_v56 }
0x219b   :  { %v2813_v58 = vsel %vm1039_vm4, %v3512_v57, 0.0 }
0x219c   :  { %2814 = vadd.xlane.f32.xlu0 %v2813_v58 }
0x2227   :  { %v2812_v60 = vpop.xlane.xlu1 %2811 }
0x2228   :  { %3513 = vrcp.f32 %v2812_v60 }
0x2229   :  { %v2815_v61 = vpop.xlane.xlu0 %2814 }
0x222a   :  { %3515 = vrcp.f32 %v2815_v61 }
0x2232   :  { %v3514_v62 = vpop.eup %3513 }
0x2233   :  { %v2817_v0 = vmul.f32 %v3514_v62, %v3510_v55 }
0x2234   :  { %v3516_v2 = vpop.eup %3515 }
0x2235   :  { %v2819_v5 = vmul.f32 %v3516_v2, %v3512_v57  ;;  %2820 = vst.msk [vmem:[#allocation2] sm:$0xff] %vm1039_vm4, %v2817_v0 }
0x2237   :  { %2821 = vst.msk [vmem:[#allocation2 + $0x8] sm:$0xff] %vm1039_vm4, %v2819_v5 }
0x2238   :  { %3528 = shalt.err (!%p3525_p4)
}
0x2239   :  { %s3529_s17 = scalar_lea.hbm %s4247_s15, 256 }
0x223a   :  { %p3530_p5 = scmp.ne.s32.totalorder %s4247_s15, %s3529_s17  ;;  %p3533_p6 = scmp.lt.u32.totalorder %s3529_s17, %s4247_s15 }
0x223c   :  { %p3535_p7 = pnand %p3533_p6, %p3530_p5 }
0x223e   :  { %3538 = shalt.err (!%p3535_p7)
}
0x223f   :  { %s3558_s21 = smov 128  }
0x2240   :  { %2833 = dma.vmem_to_hbm [thread:$0]  %s2828_s12, 256, %s4247_s15, [#allocation3], %s3558_s21, %s3558_s21, %s4262_s30  }
0x2241   :  { %3539 = dma.done.wait [#allocation3], 256  }
0x2242   :  { %3540 = vsyncadd [#allocation3], 4294967040 }
0x2243   :  { %2837 = vsyncpa [#allocation3], 1 }

</bundles_post_ra>
